<compile_context>
chip_gen: v6e
topology: v6e:2x2x1
jax: 0.10.0
libtpu: 0.0.40
codegen_flags: <defaults>
</compile_context>

<pallas_src>
import functools

import jax
import jax.numpy as jnp
from jax.experimental import pallas as pl
from jax.experimental.pallas import tpu as pltpu


def _round_up(x, m):
    return ((x + m - 1) // m) * m


def _pick_tile(dim_pad, max_tile, prefer_two_blocks):
    """Pick a tile (multiple of 128) that divides dim_pad (a 128-multiple)."""
    cands = [t for t in range(128, min(dim_pad, max_tile) + 1, 128)
             if dim_pad % t == 0]
    if not cands:
        return dim_pad
    if prefer_two_blocks:
        split = [t for t in cands if dim_pad // t >= 2]
        if split:
            return max(split)   # >=2 j-blocks -> both v7x TensorCores get work
    return max(cands)


# ----------------------------------------------------------------------------
# Fused Linear (+ BatchNorm1d, training-mode batch stats) (+ activation) kernel
# ----------------------------------------------------------------------------
def _linear_bn_act_kernel(x_ref, w_ref, b_ref, g_ref, beta_ref, o_ref, acc_ref,
                          *, tk, tn, use_bn, act, eps):
    j = pl.program_id(0)
    k = pl.program_id(1)

    @pl.when(k == 0)
    def _():
        acc_ref[...] = jnp.zeros_like(acc_ref)

    # x stays resident in VMEM; slice the current K chunk and feed the MXU in
    # bf16 (weights are already bf16), accumulating in f32.
    koff = pl.multiple_of(k * tk, tk)
    x_blk = x_ref[:, pl.ds(koff, tk)].astype(jnp.bfloat16)
    acc_ref[...] += jnp.dot(x_blk, w_ref[...],
                            preferred_element_type=jnp.float32)

    @pl.when(k == pl.num_programs(1) - 1)
    def _():
        joff = pl.multiple_of(j * tn, tn)
        y = acc_ref[...] + b_ref[:, pl.ds(joff, tn)]        # (B, tn) + (1, tn)
        if use_bn:
            # BatchNorm1d (training mode): per-feature batch mean / biased var.
            mean = jnp.mean(y, axis=0, keepdims=True)
            var = jnp.mean((y - mean) ** 2, axis=0, keepdims=True)
            y = (y - mean) * jax.lax.rsqrt(var + eps)
            y = y * g_ref[:, pl.ds(joff, tn)] + beta_ref[:, pl.ds(joff, tn)]
        if act == "relu":
            y = jnp.maximum(y, 0.0)
        elif act == "sigmoid":
            y = jax.nn.sigmoid(y)
        o_ref[...] = y.astype(o_ref.dtype)


def linear_bn_act(x, w_t, b, gamma, beta, *, use_bn, act,
                  max_tk=2048, max_tn=1024, eps=1e-5,
                  vmem_limit_bytes=32 * 1024 * 1024):
    """y = act(batchnorm(x @ w_t + b)).  x: (B, K) f32, w_t: (K, N)."""
    B, K = x.shape
    K_w, N = w_t.shape
    assert K == K_w

    K_pad = _round_up(K, 128)
    N_pad = _round_up(N, 128)
    tk = _pick_tile(K_pad, max_tk, prefer_two_blocks=False)
    tn = _pick_tile(N_pad, max_tn, prefer_two_blocks=True)

    # Zero-pad ragged dims (e.g. real inDim=20587 -> 20608); padded K columns
    # multiply zero weight rows, padded N columns are sliced off below.
    if K_pad != K:
        x = jnp.pad(x, ((0, 0), (0, K_pad - K)))
        w_t = jnp.pad(w_t, ((0, K_pad - K), (0, 0)))
    if N_pad != N:
        w_t = jnp.pad(w_t, ((0, 0), (0, N_pad - N)))
        b = jnp.pad(b, (0, N_pad - N))
        gamma = jnp.pad(gamma, (0, N_pad - N), constant_values=1.0)
        beta = jnp.pad(beta, (0, N_pad - N))

    # Stream weights as bf16 (halves HBM traffic on the only big operand).
    w_bf16 = w_t.astype(jnp.bfloat16)

    kernel = functools.partial(_linear_bn_act_kernel, tk=tk, tn=tn,
                               use_bn=use_bn, act=act, eps=eps)
    grid = (N_pad // tn, K_pad // tk)

    out = pl.pallas_call(
        kernel,
        out_shape=jax.ShapeDtypeStruct((B, N_pad), jnp.float32),
        grid_spec=pltpu.PrefetchScalarGridSpec(
            num_scalar_prefetch=0,
            grid=grid,
            in_specs=[
                # Full activation resident in VMEM for the whole grid.
                pl.BlockSpec((B, K_pad), lambda j, k: (0, 0)),
                # bf16 weight tiles: the only large streamed operand.
                pl.BlockSpec((tk, tn), lambda j, k: (k, j)),
                # bias / gamma / beta as single untiled (1, N_pad) blocks.
                pl.BlockSpec((1, N_pad), lambda j, k: (0, 0)),
                pl.BlockSpec((1, N_pad), lambda j, k: (0, 0)),
                pl.BlockSpec((1, N_pad), lambda j, k: (0, 0)),
            ],
            out_specs=pl.BlockSpec((B, tn), lambda j, k: (0, j)),
            scratch_shapes=[pltpu.VMEM((B, tn), jnp.float32)],
        ),
        compiler_params=pltpu.CompilerParams(
            dimension_semantics=("parallel", "arbitrary"),
            vmem_limit_bytes=vmem_limit_bytes,
        ),
    )(x, w_bf16, b.reshape(1, -1), gamma.reshape(1, -1), beta.reshape(1, -1))

    return out[:, :N] if N_pad != N else out


# ----------------------------------------------------------------------------
# Parameter init (PyTorch-default-style uniform for Linear; ones/zeros for BN).
# Linear weights are stored TRANSPOSED as (in_features, out_features).
# ----------------------------------------------------------------------------
def init_linear(key, in_dim, out_dim):
    k1, k2 = jax.random.split(key)
    bound = 1.0 / (in_dim ** 0.5)
    w_t = jax.random.uniform(k1, (in_dim, out_dim), jnp.float32, -bound, bound)
    b = jax.random.uniform(k2, (out_dim,), jnp.float32, -bound, bound)
    gamma = jnp.ones((out_dim,), jnp.float32)
    beta = jnp.zeros((out_dim,), jnp.float32)
    return (w_t, b, gamma, beta)


def init_autoencoder(key, in_dim, hidden, out_dim):
    keys = jax.random.split(key, 6)
    return {
        "e1": init_linear(keys[0], in_dim, hidden),
        "e2": init_linear(keys[1], hidden, hidden),
        "e3": init_linear(keys[2], hidden, out_dim),
        "d1": init_linear(keys[3], out_dim, hidden),
        "d2": init_linear(keys[4], hidden, hidden),
        "d3": init_linear(keys[5], hidden, in_dim),
    }


# ----------------------------------------------------------------------------
# Full forward:  encoded = encoder(x);  decoded = decoder(encoded)
# ----------------------------------------------------------------------------
def autoencoder_forward(params, x):
    # TODO(synk): the small middle layers (e2/e3/d1/d2) could be fused into a
    # single pallas_call keeping the (B, <=2048) activations in VMEM scratch,
    # removing the inter-layer HBM round-trips; kept as separate calls here.
    h = linear_bn_act(x, *params["e1"], use_bn=True, act="relu")
    h = linear_bn_act(h, *params["e2"], use_bn=True, act="relu")
    encoded = linear_bn_act(h, *params["e3"], use_bn=True, act="none")
    h = linear_bn_act(encoded, *params["d1"], use_bn=True, act="relu")
    h = linear_bn_act(h, *params["d2"], use_bn=True, act="relu")
    decoded = linear_bn_act(h, *params["d3"], use_bn=False, act="sigmoid")
    return encoded, decoded


# ----------------------------------------------------------------------------
# Pure-JAX reference (same math, same bf16 weight streaming) for correctness.
# ----------------------------------------------------------------------------
def _ref_layer(x, w_t, b, gamma, beta, *, use_bn, act, eps=1e-5):
    y = jnp.dot(x.astype(jnp.bfloat16), w_t.astype(jnp.bfloat16),
                preferred_element_type=jnp.float32) + b
    if use_bn:
        mean = jnp.mean(y, axis=0, keepdims=True)
        var = jnp.mean((y - mean) ** 2, axis=0, keepdims=True)
        y = (y - mean) * jax.lax.rsqrt(var + eps) * gamma + beta
    if act == "relu":
        y = jnp.maximum(y, 0.0)
    elif act == "sigmoid":
        y = jax.nn.sigmoid(y)
    return y


def autoencoder_ref(params, x):
    h = _ref_layer(x, *params["e1"], use_bn=True, act="relu")
    h = _ref_layer(h, *params["e2"], use_bn=True, act="relu")
    encoded = _ref_layer(h, *params["e3"], use_bn=True, act="none")
    h = _ref_layer(encoded, *params["d1"], use_bn=True, act="relu")
    h = _ref_layer(h, *params["d2"], use_bn=True, act="relu")
    decoded = _ref_layer(h, *params["d3"], use_bn=False, act="sigmoid")
    return encoded, decoded


if __name__ == "__main__":
    # Small shapes consistent with the module structure (real: 20587/2048/128).
    B, IN_DIM, HIDDEN, OUT_DIM = 8, 512, 256, 128

    key = jax.random.PRNGKey(0)
    k_x, k_p = jax.random.split(key)
    x = jax.random.uniform(k_x, (B, IN_DIM), jnp.float32)   # methylation-like in [0,1)
    params = init_autoencoder(k_p, IN_DIM, HIDDEN, OUT_DIM)

    encoded, decoded = jax.jit(autoencoder_forward)(params, x)
    jax.block_until_ready((encoded, decoded))

    enc_ref, dec_ref = autoencoder_ref(params, x)
    assert encoded.shape == (B, OUT_DIM) and decoded.shape == (B, IN_DIM)
    assert jnp.allclose(encoded, enc_ref, rtol=5e-3, atol=5e-3)
    assert jnp.allclose(decoded, dec_ref, rtol=5e-3, atol=5e-3)

    # TODO(synk): training-mode BatchNorm running_mean/running_var buffer
    # updates (module side effects) are not reproduced; only the forward
    # activations are computed.
    print("KERNEL_OK")
</pallas_src>

<mosaic_0001>
module attributes {stable_mosaic.version = 11 : i64} {
  func.func @_linear_bn_act_kernel(%arg0: i32, %arg1: i32, %arg2: memref<8x256xf32, #tpu.memory_space<vmem>>, %arg3: memref<256x128xbf16, #tpu.memory_space<vmem>>, %arg4: memref<1x256xf32, #tpu.memory_space<vmem>>, %arg5: memref<1x256xf32, #tpu.memory_space<vmem>>, %arg6: memref<1x256xf32, #tpu.memory_space<vmem>>, %arg7: memref<8x128xf32, #tpu.memory_space<vmem>>, %arg8: memref<8x128xf32, #tpu.memory_space<vmem>>) attributes {dimension_semantics = [#tpu.dimension_semantics<parallel>, #tpu.dimension_semantics<arbitrary>], iteration_bounds = array<i64: 2, 1>, scalar_prefetch = 0 : i64, scratch_operands = 1 : i64, tpu.core_type = #tpu.core_type<tc>, window_params = [{pipeline_mode = #tpu.pipeline_mode<synchronous>, transform_indices = @transform_0, window_bounds = array<i64: 8, 256>}, {transform_indices = @transform_1, window_bounds = array<i64: 256, 128>}, {pipeline_mode = #tpu.pipeline_mode<synchronous>, transform_indices = @transform_2, window_bounds = array<i64: 1, 256>}, {pipeline_mode = #tpu.pipeline_mode<synchronous>, transform_indices = @transform_3, window_bounds = array<i64: 1, 256>}, {pipeline_mode = #tpu.pipeline_mode<synchronous>, transform_indices = @transform_4, window_bounds = array<i64: 1, 256>}, {transform_indices = @transform_5, window_bounds = array<i64: 8, 128>}]} {
    %c0_i32 = arith.constant 0 : i32
    %0 = arith.cmpi eq, %arg1, %c0_i32 : i32
    %1 = arith.extui %0 : i1 to i32
    %c0_i32_0 = arith.constant 0 : i32
    %2 = arith.cmpi ne, %1, %c0_i32_0 : i32
    scf.if %2 {
      %cst_9 = arith.constant 0.000000e+00 : f32
      %16 = vector.broadcast %cst_9 : f32 to vector<8x128xf32>
      %c0_10 = arith.constant 0 : index
      %c0_11 = arith.constant 0 : index
      %17 = vector.load %arg8[%c0_10, %c0_11] : memref<8x128xf32, #tpu.memory_space<vmem>>, vector<8x128xf32>
      tpu.vector_store %arg8[%c0_10, %c0_11], %16 {strides = array<i32>} : memref<8x128xf32, #tpu.memory_space<vmem>>, vector<8x128xf32>,
    } else {
    }
    %c256_i32 = arith.constant 256 : i32
    %3 = arith.muli %arg1, %c256_i32 : i32
    %4 = tpu.assume_multiple %3, 256 : i32
    %c0 = arith.constant 0 : index
    %5 = arith.index_cast %4 : i32 to index
    %6 = vector.load %arg2[%c0, %5] : memref<8x256xf32, #tpu.memory_space<vmem>>, vector<8x256xf32>
    %7 = arith.truncf %6 : vector<8x256xf32> to vector<8x256xbf16>
    %c0_1 = arith.constant 0 : index
    %c0_2 = arith.constant 0 : index
    %8 = vector.load %arg8[%c0_1, %c0_2] : memref<8x128xf32, #tpu.memory_space<vmem>>, vector<8x128xf32>
    %c0_3 = arith.constant 0 : index
    %c0_4 = arith.constant 0 : index
    %9 = vector.load %arg3[%c0_3, %c0_4] : memref<256x128xbf16, #tpu.memory_space<vmem>>, vector<256x128xbf16>
    %cst = arith.constant dense<0.000000e+00> : vector<8x128xf32>
    %10 = tpu.matmul %7, %9, %cst {dimension_numbers = #tpu.dot_dimension_numbers<[1], [0], [0], [1], [0, 0, 1, 1], [], []>} : vector<8x256xbf16>, vector<256x128xbf16>, vector<8x128xf32> -> vector<8x128xf32>
    %11 = arith.addf %8, %10 : vector<8x128xf32>
    %c0_5 = arith.constant 0 : index
    %c0_6 = arith.constant 0 : index
    %12 = vector.load %arg8[%c0_5, %c0_6] : memref<8x128xf32, #tpu.memory_space<vmem>>, vector<8x128xf32>
    tpu.vector_store %arg8[%c0_5, %c0_6], %11 {strides = array<i32>} : memref<8x128xf32, #tpu.memory_space<vmem>>, vector<8x128xf32>,
    %c0_i32_7 = arith.constant 0 : i32
    %13 = arith.cmpi eq, %arg1, %c0_i32_7 : i32
    %14 = arith.extui %13 : i1 to i32
    %c0_i32_8 = arith.constant 0 : i32
    %15 = arith.cmpi ne, %14, %c0_i32_8 : i32
    scf.if %15 {
      %c128_i32 = arith.constant 128 : i32
      %16 = arith.muli %arg0, %c128_i32 : i32
      %17 = tpu.assume_multiple %16, 128 : i32
      %c0_9 = arith.constant 0 : index
      %c0_10 = arith.constant 0 : index
      %18 = vector.load %arg8[%c0_9, %c0_10] : memref<8x128xf32, #tpu.memory_space<vmem>>, vector<8x128xf32>
      %c0_11 = arith.constant 0 : index
      %19 = arith.index_cast %17 : i32 to index
      %20 = vector.load %arg4[%c0_11, %19] : memref<1x256xf32, #tpu.memory_space<vmem>>, vector<1x128xf32>
      %21 = vector.broadcast %20 : vector<1x128xf32> to vector<8x128xf32>
      %22 = arith.addf %18, %21 : vector<8x128xf32>
      %cst_12 = arith.constant dense<0.000000e+00> : vector<128xf32>
      %23 = vector.multi_reduction <add>, %22, %cst_12 [0] : vector<8x128xf32> to vector<128xf32>
      %24 = vector.shape_cast %23 : vector<128xf32> to vector<1x128xf32>
      %cst_13 = arith.constant 8.000000e+00 : f32
      %25 = vector.broadcast %cst_13 : f32 to vector<1x128xf32>
      %26 = arith.divf %24, %25 : vector<1x128xf32>
      %27 = vector.broadcast %26 : vector<1x128xf32> to vector<8x128xf32>
      %28 = arith.subf %22, %27 : vector<8x128xf32>
      %29 = arith.mulf %28, %28 : vector<8x128xf32>
      %cst_14 = arith.constant dense<0.000000e+00> : vector<128xf32>
      %30 = vector.multi_reduction <add>, %29, %cst_14 [0] : vector<8x128xf32> to vector<128xf32>
      %31 = vector.shape_cast %30 : vector<128xf32> to vector<1x128xf32>
      %cst_15 = arith.constant 8.000000e+00 : f32
      %32 = vector.broadcast %cst_15 : f32 to vector<1x128xf32>
      %33 = arith.divf %31, %32 : vector<1x128xf32>
      %34 = vector.broadcast %26 : vector<1x128xf32> to vector<8x128xf32>
      %35 = arith.subf %22, %34 : vector<8x128xf32>
      %cst_16 = arith.constant 9.99999974E-6 : f32
      %36 = vector.broadcast %cst_16 : f32 to vector<1x128xf32>
      %37 = arith.addf %33, %36 : vector<1x128xf32>
      %38 = math.rsqrt %37 : vector<1x128xf32>
      %39 = vector.broadcast %38 : vector<1x128xf32> to vector<8x128xf32>
      %40 = arith.mulf %35, %39 : vector<8x128xf32>
      %c0_17 = arith.constant 0 : index
      %41 = arith.index_cast %17 : i32 to index
      %42 = vector.load %arg5[%c0_17, %41] : memref<1x256xf32, #tpu.memory_space<vmem>>, vector<1x128xf32>
      %43 = vector.broadcast %42 : vector<1x128xf32> to vector<8x128xf32>
      %44 = arith.mulf %40, %43 : vector<8x128xf32>
      %c0_18 = arith.constant 0 : index
      %45 = arith.index_cast %17 : i32 to index
      %46 = vector.load %arg6[%c0_18, %45] : memref<1x256xf32, #tpu.memory_space<vmem>>, vector<1x128xf32>
      %47 = vector.broadcast %46 : vector<1x128xf32> to vector<8x128xf32>
      %48 = arith.addf %44, %47 : vector<8x128xf32>
      %cst_19 = arith.constant 0.000000e+00 : f32
      %49 = vector.broadcast %cst_19 : f32 to vector<8x128xf32>
      %50 = arith.maximumf %48, %49 : vector<8x128xf32>
      %c0_20 = arith.constant 0 : index
      %c0_21 = arith.constant 0 : index
      %51 = vector.load %arg7[%c0_20, %c0_21] : memref<8x128xf32, #tpu.memory_space<vmem>>, vector<8x128xf32>
      tpu.vector_store %arg7[%c0_20, %c0_21], %50 {strides = array<i32>} : memref<8x128xf32, #tpu.memory_space<vmem>>, vector<8x128xf32>,
    } else {
    }
    return
  }
  func.func @transform_0(%arg0: i32, %arg1: i32) -> (i32, i32) {
    %c0_i32 = arith.constant 0 : i32
    %c0_i32_0 = arith.constant 0 : i32
    %c0_i32_1 = arith.constant 0 : i32
    return %c0_i32, %c0_i32_0 : i32, i32
  }
  func.func @transform_1(%arg0: i32, %arg1: i32) -> (i32, i32) {
    %c0_i32 = arith.constant 0 : i32
    return %arg1, %arg0 : i32, i32
  }
  func.func @transform_2(%arg0: i32, %arg1: i32) -> (i32, i32) {
    %c0_i32 = arith.constant 0 : i32
    %c0_i32_0 = arith.constant 0 : i32
    %c0_i32_1 = arith.constant 0 : i32
    return %c0_i32, %c0_i32_0 : i32, i32
  }
  func.func @transform_3(%arg0: i32, %arg1: i32) -> (i32, i32) {
    %c0_i32 = arith.constant 0 : i32
    %c0_i32_0 = arith.constant 0 : i32
    %c0_i32_1 = arith.constant 0 : i32
    return %c0_i32, %c0_i32_0 : i32, i32
  }
  func.func @transform_4(%arg0: i32, %arg1: i32) -> (i32, i32) {
    %c0_i32 = arith.constant 0 : i32
    %c0_i32_0 = arith.constant 0 : i32
    %c0_i32_1 = arith.constant 0 : i32
    return %c0_i32, %c0_i32_0 : i32, i32
  }
  func.func @transform_5(%arg0: i32, %arg1: i32) -> (i32, i32) {
    %c0_i32 = arith.constant 0 : i32
    %c0_i32_0 = arith.constant 0 : i32
    return %c0_i32, %arg0 : i32, i32
  }
}

module attributes {stable_mosaic.version = 11 : i64} {
  func.func @_linear_bn_act_kernel(%arg0: i32, %arg1: i32, %arg2: memref<8x512xf32, #tpu.memory_space<vmem>>, %arg3: memref<512x128xbf16, #tpu.memory_space<vmem>>, %arg4: memref<1x256xf32, #tpu.memory_space<vmem>>, %arg5: memref<1x256xf32, #tpu.memory_space<vmem>>, %arg6: memref<1x256xf32, #tpu.memory_space<vmem>>, %arg7: memref<8x128xf32, #tpu.memory_space<vmem>>, %arg8: memref<8x128xf32, #tpu.memory_space<vmem>>) attributes {dimension_semantics = [#tpu.dimension_semantics<parallel>, #tpu.dimension_semantics<arbitrary>], iteration_bounds = array<i64: 2, 1>, scalar_prefetch = 0 : i64, scratch_operands = 1 : i64, tpu.core_type = #tpu.core_type<tc>, window_params = [{pipeline_mode = #tpu.pipeline_mode<synchronous>, transform_indices = @transform_0, window_bounds = array<i64: 8, 512>}, {transform_indices = @transform_1, window_bounds = array<i64: 512, 128>}, {pipeline_mode = #tpu.pipeline_mode<synchronous>, transform_indices = @transform_2, window_bounds = array<i64: 1, 256>}, {pipeline_mode = #tpu.pipeline_mode<synchronous>, transform_indices = @transform_3, window_bounds = array<i64: 1, 256>}, {pipeline_mode = #tpu.pipeline_mode<synchronous>, transform_indices = @transform_4, window_bounds = array<i64: 1, 256>}, {transform_indices = @transform_5, window_bounds = array<i64: 8, 128>}]} {
    %c0_i32 = arith.constant 0 : i32
    %0 = arith.cmpi eq, %arg1, %c0_i32 : i32
    %1 = arith.extui %0 : i1 to i32
    %c0_i32_0 = arith.constant 0 : i32
    %2 = arith.cmpi ne, %1, %c0_i32_0 : i32
    scf.if %2 {
      %cst_9 = arith.constant 0.000000e+00 : f32
      %16 = vector.broadcast %cst_9 : f32 to vector<8x128xf32>
      %c0_10 = arith.constant 0 : index
      %c0_11 = arith.constant 0 : index
      %17 = vector.load %arg8[%c0_10, %c0_11] : memref<8x128xf32, #tpu.memory_space<vmem>>, vector<8x128xf32>
      tpu.vector_store %arg8[%c0_10, %c0_11], %16 {strides = array<i32>} : memref<8x128xf32, #tpu.memory_space<vmem>>, vector<8x128xf32>,
    } else {
    }
    %c512_i32 = arith.constant 512 : i32
    %3 = arith.muli %arg1, %c512_i32 : i32
    %4 = tpu.assume_multiple %3, 512 : i32
    %c0 = arith.constant 0 : index
    %5 = arith.index_cast %4 : i32 to index
    %6 = vector.load %arg2[%c0, %5] : memref<8x512xf32, #tpu.memory_space<vmem>>, vector<8x512xf32>
    %7 = arith.truncf %6 : vector<8x512xf32> to vector<8x512xbf16>
    %c0_1 = arith.constant 0 : index
    %c0_2 = arith.constant 0 : index
    %8 = vector.load %arg8[%c0_1, %c0_2] : memref<8x128xf32, #tpu.memory_space<vmem>>, vector<8x128xf32>
    %c0_3 = arith.constant 0 : index
    %c0_4 = arith.constant 0 : index
    %9 = vector.load %arg3[%c0_3, %c0_4] : memref<512x128xbf16, #tpu.memory_space<vmem>>, vector<512x128xbf16>
    %cst = arith.constant dense<0.000000e+00> : vector<8x128xf32>
    %10 = tpu.matmul %7, %9, %cst {dimension_numbers = #tpu.dot_dimension_numbers<[1], [0], [0], [1], [0, 0, 1, 1], [], []>} : vector<8x512xbf16>, vector<512x128xbf16>, vector<8x128xf32> -> vector<8x128xf32>
    %11 = arith.addf %8, %10 : vector<8x128xf32>
    %c0_5 = arith.constant 0 : index
    %c0_6 = arith.constant 0 : index
    %12 = vector.load %arg8[%c0_5, %c0_6] : memref<8x128xf32, #tpu.memory_space<vmem>>, vector<8x128xf32>
    tpu.vector_store %arg8[%c0_5, %c0_6], %11 {strides = array<i32>} : memref<8x128xf32, #tpu.memory_space<vmem>>, vector<8x128xf32>,
    %c0_i32_7 = arith.constant 0 : i32
    %13 = arith.cmpi eq, %arg1, %c0_i32_7 : i32
    %14 = arith.extui %13 : i1 to i32
    %c0_i32_8 = arith.constant 0 : i32
    %15 = arith.cmpi ne, %14, %c0_i32_8 : i32
    scf.if %15 {
      %c128_i32 = arith.constant 128 : i32
      %16 = arith.muli %arg0, %c128_i32 : i32
      %17 = tpu.assume_multiple %16, 128 : i32
      %c0_9 = arith.constant 0 : index
      %c0_10 = arith.constant 0 : index
      %18 = vector.load %arg8[%c0_9, %c0_10] : memref<8x128xf32, #tpu.memory_space<vmem>>, vector<8x128xf32>
      %c0_11 = arith.constant 0 : index
      %19 = arith.index_cast %17 : i32 to index
      %20 = vector.load %arg4[%c0_11, %19] : memref<1x256xf32, #tpu.memory_space<vmem>>, vector<1x128xf32>
      %21 = vector.broadcast %20 : vector<1x128xf32> to vector<8x128xf32>
      %22 = arith.addf %18, %21 : vector<8x128xf32>
      %cst_12 = arith.constant dense<0.000000e+00> : vector<128xf32>
      %23 = vector.multi_reduction <add>, %22, %cst_12 [0] : vector<8x128xf32> to vector<128xf32>
      %24 = vector.shape_cast %23 : vector<128xf32> to vector<1x128xf32>
      %cst_13 = arith.constant 8.000000e+00 : f32
      %25 = vector.broadcast %cst_13 : f32 to vector<1x128xf32>
      %26 = arith.divf %24, %25 : vector<1x128xf32>
      %27 = vector.broadcast %26 : vector<1x128xf32> to vector<8x128xf32>
      %28 = arith.subf %22, %27 : vector<8x128xf32>
      %29 = arith.mulf %28, %28 : vector<8x128xf32>
      %cst_14 = arith.constant dense<0.000000e+00> : vector<128xf32>
      %30 = vector.multi_reduction <add>, %29, %cst_14 [0] : vector<8x128xf32> to vector<128xf32>
      %31 = vector.shape_cast %30 : vector<128xf32> to vector<1x128xf32>
      %cst_15 = arith.constant 8.000000e+00 : f32
      %32 = vector.broadcast %cst_15 : f32 to vector<1x128xf32>
      %33 = arith.divf %31, %32 : vector<1x128xf32>
      %34 = vector.broadcast %26 : vector<1x128xf32> to vector<8x128xf32>
      %35 = arith.subf %22, %34 : vector<8x128xf32>
      %cst_16 = arith.constant 9.99999974E-6 : f32
      %36 = vector.broadcast %cst_16 : f32 to vector<1x128xf32>
      %37 = arith.addf %33, %36 : vector<1x128xf32>
      %38 = math.rsqrt %37 : vector<1x128xf32>
      %39 = vector.broadcast %38 : vector<1x128xf32> to vector<8x128xf32>
      %40 = arith.mulf %35, %39 : vector<8x128xf32>
      %c0_17 = arith.constant 0 : index
      %41 = arith.index_cast %17 : i32 to index
      %42 = vector.load %arg5[%c0_17, %41] : memref<1x256xf32, #tpu.memory_space<vmem>>, vector<1x128xf32>
      %43 = vector.broadcast %42 : vector<1x128xf32> to vector<8x128xf32>
      %44 = arith.mulf %40, %43 : vector<8x128xf32>
      %c0_18 = arith.constant 0 : index
      %45 = arith.index_cast %17 : i32 to index
      %46 = vector.load %arg6[%c0_18, %45] : memref<1x256xf32, #tpu.memory_space<vmem>>, vector<1x128xf32>
      %47 = vector.broadcast %46 : vector<1x128xf32> to vector<8x128xf32>
      %48 = arith.addf %44, %47 : vector<8x128xf32>
      %cst_19 = arith.constant 0.000000e+00 : f32
      %49 = vector.broadcast %cst_19 : f32 to vector<8x128xf32>
      %50 = arith.maximumf %48, %49 : vector<8x128xf32>
      %c0_20 = arith.constant 0 : index
      %c0_21 = arith.constant 0 : index
      %51 = vector.load %arg7[%c0_20, %c0_21] : memref<8x128xf32, #tpu.memory_space<vmem>>, vector<8x128xf32>
      tpu.vector_store %arg7[%c0_20, %c0_21], %50 {strides = array<i32>} : memref<8x128xf32, #tpu.memory_space<vmem>>, vector<8x128xf32>,
    } else {
    }
    return
  }
  func.func @transform_0(%arg0: i32, %arg1: i32) -> (i32, i32) {
    %c0_i32 = arith.constant 0 : i32
    %c0_i32_0 = arith.constant 0 : i32
    %c0_i32_1 = arith.constant 0 : i32
    return %c0_i32, %c0_i32_0 : i32, i32
  }
  func.func @transform_1(%arg0: i32, %arg1: i32) -> (i32, i32) {
    %c0_i32 = arith.constant 0 : i32
    return %arg1, %arg0 : i32, i32
  }
  func.func @transform_2(%arg0: i32, %arg1: i32) -> (i32, i32) {
    %c0_i32 = arith.constant 0 : i32
    %c0_i32_0 = arith.constant 0 : i32
    %c0_i32_1 = arith.constant 0 : i32
    return %c0_i32, %c0_i32_0 : i32, i32
  }
  func.func @transform_3(%arg0: i32, %arg1: i32) -> (i32, i32) {
    %c0_i32 = arith.constant 0 : i32
    %c0_i32_0 = arith.constant 0 : i32
    %c0_i32_1 = arith.constant 0 : i32
    return %c0_i32, %c0_i32_0 : i32, i32
  }
  func.func @transform_4(%arg0: i32, %arg1: i32) -> (i32, i32) {
    %c0_i32 = arith.constant 0 : i32
    %c0_i32_0 = arith.constant 0 : i32
    %c0_i32_1 = arith.constant 0 : i32
    return %c0_i32, %c0_i32_0 : i32, i32
  }
  func.func @transform_5(%arg0: i32, %arg1: i32) -> (i32, i32) {
    %c0_i32 = arith.constant 0 : i32
    %c0_i32_0 = arith.constant 0 : i32
    return %c0_i32, %arg0 : i32, i32
  }
}

module attributes {stable_mosaic.version = 11 : i64} {
  func.func @_linear_bn_act_kernel(%arg0: i32, %arg1: i32, %arg2: memref<8x256xf32, #tpu.memory_space<vmem>>, %arg3: memref<256x128xbf16, #tpu.memory_space<vmem>>, %arg4: memref<1x128xf32, #tpu.memory_space<vmem>>, %arg5: memref<1x128xf32, #tpu.memory_space<vmem>>, %arg6: memref<1x128xf32, #tpu.memory_space<vmem>>, %arg7: memref<8x128xf32, #tpu.memory_space<vmem>>, %arg8: memref<8x128xf32, #tpu.memory_space<vmem>>) attributes {dimension_semantics = [#tpu.dimension_semantics<parallel>, #tpu.dimension_semantics<arbitrary>], iteration_bounds = array<i64: 1, 1>, scalar_prefetch = 0 : i64, scratch_operands = 1 : i64, tpu.core_type = #tpu.core_type<tc>, window_params = [{pipeline_mode = #tpu.pipeline_mode<synchronous>, transform_indices = @transform_0, window_bounds = array<i64: 8, 256>}, {transform_indices = @transform_1, window_bounds = array<i64: 256, 128>}, {pipeline_mode = #tpu.pipeline_mode<synchronous>, transform_indices = @transform_2, window_bounds = array<i64: 1, 128>}, {pipeline_mode = #tpu.pipeline_mode<synchronous>, transform_indices = @transform_3, window_bounds = array<i64: 1, 128>}, {pipeline_mode = #tpu.pipeline_mode<synchronous>, transform_indices = @transform_4, window_bounds = array<i64: 1, 128>}, {transform_indices = @transform_5, window_bounds = array<i64: 8, 128>}]} {
    %c0_i32 = arith.constant 0 : i32
    %0 = arith.cmpi eq, %arg1, %c0_i32 : i32
    %1 = arith.extui %0 : i1 to i32
    %c0_i32_0 = arith.constant 0 : i32
    %2 = arith.cmpi ne, %1, %c0_i32_0 : i32
    scf.if %2 {
      %cst_9 = arith.constant 0.000000e+00 : f32
      %16 = vector.broadcast %cst_9 : f32 to vector<8x128xf32>
      %c0_10 = arith.constant 0 : index
      %c0_11 = arith.constant 0 : index
      %17 = vector.load %arg8[%c0_10, %c0_11] : memref<8x128xf32, #tpu.memory_space<vmem>>, vector<8x128xf32>
      tpu.vector_store %arg8[%c0_10, %c0_11], %16 {strides = array<i32>} : memref<8x128xf32, #tpu.memory_space<vmem>>, vector<8x128xf32>,
    } else {
    }
    %c256_i32 = arith.constant 256 : i32
    %3 = arith.muli %arg1, %c256_i32 : i32
    %4 = tpu.assume_multiple %3, 256 : i32
    %c0 = arith.constant 0 : index
    %5 = arith.index_cast %4 : i32 to index
    %6 = vector.load %arg2[%c0, %5] : memref<8x256xf32, #tpu.memory_space<vmem>>, vector<8x256xf32>
    %7 = arith.truncf %6 : vector<8x256xf32> to vector<8x256xbf16>
    %c0_1 = arith.constant 0 : index
    %c0_2 = arith.constant 0 : index
    %8 = vector.load %arg8[%c0_1, %c0_2] : memref<8x128xf32, #tpu.memory_space<vmem>>, vector<8x128xf32>
    %c0_3 = arith.constant 0 : index
    %c0_4 = arith.constant 0 : index
    %9 = vector.load %arg3[%c0_3, %c0_4] : memref<256x128xbf16, #tpu.memory_space<vmem>>, vector<256x128xbf16>
    %cst = arith.constant dense<0.000000e+00> : vector<8x128xf32>
    %10 = tpu.matmul %7, %9, %cst {dimension_numbers = #tpu.dot_dimension_numbers<[1], [0], [0], [1], [0, 0, 1, 1], [], []>} : vector<8x256xbf16>, vector<256x128xbf16>, vector<8x128xf32> -> vector<8x128xf32>
    %11 = arith.addf %8, %10 : vector<8x128xf32>
    %c0_5 = arith.constant 0 : index
    %c0_6 = arith.constant 0 : index
    %12 = vector.load %arg8[%c0_5, %c0_6] : memref<8x128xf32, #tpu.memory_space<vmem>>, vector<8x128xf32>
    tpu.vector_store %arg8[%c0_5, %c0_6], %11 {strides = array<i32>} : memref<8x128xf32, #tpu.memory_space<vmem>>, vector<8x128xf32>,
    %c0_i32_7 = arith.constant 0 : i32
    %13 = arith.cmpi eq, %arg1, %c0_i32_7 : i32
    %14 = arith.extui %13 : i1 to i32
    %c0_i32_8 = arith.constant 0 : i32
    %15 = arith.cmpi ne, %14, %c0_i32_8 : i32
    scf.if %15 {
      %c128_i32 = arith.constant 128 : i32
      %16 = arith.muli %arg0, %c128_i32 : i32
      %17 = tpu.assume_multiple %16, 128 : i32
      %c0_9 = arith.constant 0 : index
      %c0_10 = arith.constant 0 : index
      %18 = vector.load %arg8[%c0_9, %c0_10] : memref<8x128xf32, #tpu.memory_space<vmem>>, vector<8x128xf32>
      %c0_11 = arith.constant 0 : index
      %19 = arith.index_cast %17 : i32 to index
      %20 = vector.load %arg4[%c0_11, %19] : memref<1x128xf32, #tpu.memory_space<vmem>>, vector<1x128xf32>
      %21 = vector.broadcast %20 : vector<1x128xf32> to vector<8x128xf32>
      %22 = arith.addf %18, %21 : vector<8x128xf32>
      %cst_12 = arith.constant dense<0.000000e+00> : vector<128xf32>
      %23 = vector.multi_reduction <add>, %22, %cst_12 [0] : vector<8x128xf32> to vector<128xf32>
      %24 = vector.shape_cast %23 : vector<128xf32> to vector<1x128xf32>
      %cst_13 = arith.constant 8.000000e+00 : f32
      %25 = vector.broadcast %cst_13 : f32 to vector<1x128xf32>
      %26 = arith.divf %24, %25 : vector<1x128xf32>
      %27 = vector.broadcast %26 : vector<1x128xf32> to vector<8x128xf32>
      %28 = arith.subf %22, %27 : vector<8x128xf32>
      %29 = arith.mulf %28, %28 : vector<8x128xf32>
      %cst_14 = arith.constant dense<0.000000e+00> : vector<128xf32>
      %30 = vector.multi_reduction <add>, %29, %cst_14 [0] : vector<8x128xf32> to vector<128xf32>
      %31 = vector.shape_cast %30 : vector<128xf32> to vector<1x128xf32>
      %cst_15 = arith.constant 8.000000e+00 : f32
      %32 = vector.broadcast %cst_15 : f32 to vector<1x128xf32>
      %33 = arith.divf %31, %32 : vector<1x128xf32>
      %34 = vector.broadcast %26 : vector<1x128xf32> to vector<8x128xf32>
      %35 = arith.subf %22, %34 : vector<8x128xf32>
      %cst_16 = arith.constant 9.99999974E-6 : f32
      %36 = vector.broadcast %cst_16 : f32 to vector<1x128xf32>
      %37 = arith.addf %33, %36 : vector<1x128xf32>
      %38 = math.rsqrt %37 : vector<1x128xf32>
      %39 = vector.broadcast %38 : vector<1x128xf32> to vector<8x128xf32>
      %40 = arith.mulf %35, %39 : vector<8x128xf32>
      %c0_17 = arith.constant 0 : index
      %41 = arith.index_cast %17 : i32 to index
      %42 = vector.load %arg5[%c0_17, %41] : memref<1x128xf32, #tpu.memory_space<vmem>>, vector<1x128xf32>
      %43 = vector.broadcast %42 : vector<1x128xf32> to vector<8x128xf32>
      %44 = arith.mulf %40, %43 : vector<8x128xf32>
      %c0_18 = arith.constant 0 : index
      %45 = arith.index_cast %17 : i32 to index
      %46 = vector.load %arg6[%c0_18, %45] : memref<1x128xf32, #tpu.memory_space<vmem>>, vector<1x128xf32>
      %47 = vector.broadcast %46 : vector<1x128xf32> to vector<8x128xf32>
      %48 = arith.addf %44, %47 : vector<8x128xf32>
      %c0_19 = arith.constant 0 : index
      %c0_20 = arith.constant 0 : index
      %49 = vector.load %arg7[%c0_19, %c0_20] : memref<8x128xf32, #tpu.memory_space<vmem>>, vector<8x128xf32>
      tpu.vector_store %arg7[%c0_19, %c0_20], %48 {strides = array<i32>} : memref<8x128xf32, #tpu.memory_space<vmem>>, vector<8x128xf32>,
    } else {
    }
    return
  }
  func.func @transform_0(%arg0: i32, %arg1: i32) -> (i32, i32) {
    %c0_i32 = arith.constant 0 : i32
    %c0_i32_0 = arith.constant 0 : i32
    %c0_i32_1 = arith.constant 0 : i32
    return %c0_i32, %c0_i32_0 : i32, i32
  }
  func.func @transform_1(%arg0: i32, %arg1: i32) -> (i32, i32) {
    %c0_i32 = arith.constant 0 : i32
    return %arg1, %arg0 : i32, i32
  }
  func.func @transform_2(%arg0: i32, %arg1: i32) -> (i32, i32) {
    %c0_i32 = arith.constant 0 : i32
    %c0_i32_0 = arith.constant 0 : i32
    %c0_i32_1 = arith.constant 0 : i32
    return %c0_i32, %c0_i32_0 : i32, i32
  }
  func.func @transform_3(%arg0: i32, %arg1: i32) -> (i32, i32) {
    %c0_i32 = arith.constant 0 : i32
    %c0_i32_0 = arith.constant 0 : i32
    %c0_i32_1 = arith.constant 0 : i32
    return %c0_i32, %c0_i32_0 : i32, i32
  }
  func.func @transform_4(%arg0: i32, %arg1: i32) -> (i32, i32) {
    %c0_i32 = arith.constant 0 : i32
    %c0_i32_0 = arith.constant 0 : i32
    %c0_i32_1 = arith.constant 0 : i32
    return %c0_i32, %c0_i32_0 : i32, i32
  }
  func.func @transform_5(%arg0: i32, %arg1: i32) -> (i32, i32) {
    %c0_i32 = arith.constant 0 : i32
    %c0_i32_0 = arith.constant 0 : i32
    return %c0_i32, %arg0 : i32, i32
  }
}

module attributes {stable_mosaic.version = 11 : i64} {
  func.func @_linear_bn_act_kernel(%arg0: i32, %arg1: i32, %arg2: memref<8x128xf32, #tpu.memory_space<vmem>>, %arg3: memref<128x128xbf16, #tpu.memory_space<vmem>>, %arg4: memref<1x256xf32, #tpu.memory_space<vmem>>, %arg5: memref<1x256xf32, #tpu.memory_space<vmem>>, %arg6: memref<1x256xf32, #tpu.memory_space<vmem>>, %arg7: memref<8x128xf32, #tpu.memory_space<vmem>>, %arg8: memref<8x128xf32, #tpu.memory_space<vmem>>) attributes {dimension_semantics = [#tpu.dimension_semantics<parallel>, #tpu.dimension_semantics<arbitrary>], iteration_bounds = array<i64: 2, 1>, scalar_prefetch = 0 : i64, scratch_operands = 1 : i64, tpu.core_type = #tpu.core_type<tc>, window_params = [{pipeline_mode = #tpu.pipeline_mode<synchronous>, transform_indices = @transform_0, window_bounds = array<i64: 8, 128>}, {transform_indices = @transform_1, window_bounds = array<i64: 128, 128>}, {pipeline_mode = #tpu.pipeline_mode<synchronous>, transform_indices = @transform_2, window_bounds = array<i64: 1, 256>}, {pipeline_mode = #tpu.pipeline_mode<synchronous>, transform_indices = @transform_3, window_bounds = array<i64: 1, 256>}, {pipeline_mode = #tpu.pipeline_mode<synchronous>, transform_indices = @transform_4, window_bounds = array<i64: 1, 256>}, {transform_indices = @transform_5, window_bounds = array<i64: 8, 128>}]} {
    %c0_i32 = arith.constant 0 : i32
    %0 = arith.cmpi eq, %arg1, %c0_i32 : i32
    %1 = arith.extui %0 : i1 to i32
    %c0_i32_0 = arith.constant 0 : i32
    %2 = arith.cmpi ne, %1, %c0_i32_0 : i32
    scf.if %2 {
      %cst_9 = arith.constant 0.000000e+00 : f32
      %16 = vector.broadcast %cst_9 : f32 to vector<8x128xf32>
      %c0_10 = arith.constant 0 : index
      %c0_11 = arith.constant 0 : index
      %17 = vector.load %arg8[%c0_10, %c0_11] : memref<8x128xf32, #tpu.memory_space<vmem>>, vector<8x128xf32>
      tpu.vector_store %arg8[%c0_10, %c0_11], %16 {strides = array<i32>} : memref<8x128xf32, #tpu.memory_space<vmem>>, vector<8x128xf32>,
    } else {
    }
    %c128_i32 = arith.constant 128 : i32
    %3 = arith.muli %arg1, %c128_i32 : i32
    %4 = tpu.assume_multiple %3, 128 : i32
    %c0 = arith.constant 0 : index
    %5 = arith.index_cast %4 : i32 to index
    %6 = vector.load %arg2[%c0, %5] : memref<8x128xf32, #tpu.memory_space<vmem>>, vector<8x128xf32>
    %7 = arith.truncf %6 : vector<8x128xf32> to vector<8x128xbf16>
    %c0_1 = arith.constant 0 : index
    %c0_2 = arith.constant 0 : index
    %8 = vector.load %arg8[%c0_1, %c0_2] : memref<8x128xf32, #tpu.memory_space<vmem>>, vector<8x128xf32>
    %c0_3 = arith.constant 0 : index
    %c0_4 = arith.constant 0 : index
    %9 = vector.load %arg3[%c0_3, %c0_4] : memref<128x128xbf16, #tpu.memory_space<vmem>>, vector<128x128xbf16>
    %cst = arith.constant dense<0.000000e+00> : vector<8x128xf32>
    %10 = tpu.matmul %7, %9, %cst {dimension_numbers = #tpu.dot_dimension_numbers<[1], [0], [0], [1], [0, 0, 1, 1], [], []>} : vector<8x128xbf16>, vector<128x128xbf16>, vector<8x128xf32> -> vector<8x128xf32>
    %11 = arith.addf %8, %10 : vector<8x128xf32>
    %c0_5 = arith.constant 0 : index
    %c0_6 = arith.constant 0 : index
    %12 = vector.load %arg8[%c0_5, %c0_6] : memref<8x128xf32, #tpu.memory_space<vmem>>, vector<8x128xf32>
    tpu.vector_store %arg8[%c0_5, %c0_6], %11 {strides = array<i32>} : memref<8x128xf32, #tpu.memory_space<vmem>>, vector<8x128xf32>,
    %c0_i32_7 = arith.constant 0 : i32
    %13 = arith.cmpi eq, %arg1, %c0_i32_7 : i32
    %14 = arith.extui %13 : i1 to i32
    %c0_i32_8 = arith.constant 0 : i32
    %15 = arith.cmpi ne, %14, %c0_i32_8 : i32
    scf.if %15 {
      %c128_i32_9 = arith.constant 128 : i32
      %16 = arith.muli %arg0, %c128_i32_9 : i32
      %17 = tpu.assume_multiple %16, 128 : i32
      %c0_10 = arith.constant 0 : index
      %c0_11 = arith.constant 0 : index
      %18 = vector.load %arg8[%c0_10, %c0_11] : memref<8x128xf32, #tpu.memory_space<vmem>>, vector<8x128xf32>
      %c0_12 = arith.constant 0 : index
      %19 = arith.index_cast %17 : i32 to index
      %20 = vector.load %arg4[%c0_12, %19] : memref<1x256xf32, #tpu.memory_space<vmem>>, vector<1x128xf32>
      %21 = vector.broadcast %20 : vector<1x128xf32> to vector<8x128xf32>
      %22 = arith.addf %18, %21 : vector<8x128xf32>
      %cst_13 = arith.constant dense<0.000000e+00> : vector<128xf32>
      %23 = vector.multi_reduction <add>, %22, %cst_13 [0] : vector<8x128xf32> to vector<128xf32>
      %24 = vector.shape_cast %23 : vector<128xf32> to vector<1x128xf32>
      %cst_14 = arith.constant 8.000000e+00 : f32
      %25 = vector.broadcast %cst_14 : f32 to vector<1x128xf32>
      %26 = arith.divf %24, %25 : vector<1x128xf32>
      %27 = vector.broadcast %26 : vector<1x128xf32> to vector<8x128xf32>
      %28 = arith.subf %22, %27 : vector<8x128xf32>
      %29 = arith.mulf %28, %28 : vector<8x128xf32>
      %cst_15 = arith.constant dense<0.000000e+00> : vector<128xf32>
      %30 = vector.multi_reduction <add>, %29, %cst_15 [0] : vector<8x128xf32> to vector<128xf32>
      %31 = vector.shape_cast %30 : vector<128xf32> to vector<1x128xf32>
      %cst_16 = arith.constant 8.000000e+00 : f32
      %32 = vector.broadcast %cst_16 : f32 to vector<1x128xf32>
      %33 = arith.divf %31, %32 : vector<1x128xf32>
      %34 = vector.broadcast %26 : vector<1x128xf32> to vector<8x128xf32>
      %35 = arith.subf %22, %34 : vector<8x128xf32>
      %cst_17 = arith.constant 9.99999974E-6 : f32
      %36 = vector.broadcast %cst_17 : f32 to vector<1x128xf32>
      %37 = arith.addf %33, %36 : vector<1x128xf32>
      %38 = math.rsqrt %37 : vector<1x128xf32>
      %39 = vector.broadcast %38 : vector<1x128xf32> to vector<8x128xf32>
      %40 = arith.mulf %35, %39 : vector<8x128xf32>
      %c0_18 = arith.constant 0 : index
      %41 = arith.index_cast %17 : i32 to index
      %42 = vector.load %arg5[%c0_18, %41] : memref<1x256xf32, #tpu.memory_space<vmem>>, vector<1x128xf32>
      %43 = vector.broadcast %42 : vector<1x128xf32> to vector<8x128xf32>
      %44 = arith.mulf %40, %43 : vector<8x128xf32>
      %c0_19 = arith.constant 0 : index
      %45 = arith.index_cast %17 : i32 to index
      %46 = vector.load %arg6[%c0_19, %45] : memref<1x256xf32, #tpu.memory_space<vmem>>, vector<1x128xf32>
      %47 = vector.broadcast %46 : vector<1x128xf32> to vector<8x128xf32>
      %48 = arith.addf %44, %47 : vector<8x128xf32>
      %cst_20 = arith.constant 0.000000e+00 : f32
      %49 = vector.broadcast %cst_20 : f32 to vector<8x128xf32>
      %50 = arith.maximumf %48, %49 : vector<8x128xf32>
      %c0_21 = arith.constant 0 : index
      %c0_22 = arith.constant 0 : index
      %51 = vector.load %arg7[%c0_21, %c0_22] : memref<8x128xf32, #tpu.memory_space<vmem>>, vector<8x128xf32>
      tpu.vector_store %arg7[%c0_21, %c0_22], %50 {strides = array<i32>} : memref<8x128xf32, #tpu.memory_space<vmem>>, vector<8x128xf32>,
    } else {
    }
    return
  }
  func.func @transform_0(%arg0: i32, %arg1: i32) -> (i32, i32) {
    %c0_i32 = arith.constant 0 : i32
    %c0_i32_0 = arith.constant 0 : i32
    %c0_i32_1 = arith.constant 0 : i32
    return %c0_i32, %c0_i32_0 : i32, i32
  }
  func.func @transform_1(%arg0: i32, %arg1: i32) -> (i32, i32) {
    %c0_i32 = arith.constant 0 : i32
    return %arg1, %arg0 : i32, i32
  }
  func.func @transform_2(%arg0: i32, %arg1: i32) -> (i32, i32) {
    %c0_i32 = arith.constant 0 : i32
    %c0_i32_0 = arith.constant 0 : i32
    %c0_i32_1 = arith.constant 0 : i32
    return %c0_i32, %c0_i32_0 : i32, i32
  }
  func.func @transform_3(%arg0: i32, %arg1: i32) -> (i32, i32) {
    %c0_i32 = arith.constant 0 : i32
    %c0_i32_0 = arith.constant 0 : i32
    %c0_i32_1 = arith.constant 0 : i32
    return %c0_i32, %c0_i32_0 : i32, i32
  }
  func.func @transform_4(%arg0: i32, %arg1: i32) -> (i32, i32) {
    %c0_i32 = arith.constant 0 : i32
    %c0_i32_0 = arith.constant 0 : i32
    %c0_i32_1 = arith.constant 0 : i32
    return %c0_i32, %c0_i32_0 : i32, i32
  }
  func.func @transform_5(%arg0: i32, %arg1: i32) -> (i32, i32) {
    %c0_i32 = arith.constant 0 : i32
    %c0_i32_0 = arith.constant 0 : i32
    return %c0_i32, %arg0 : i32, i32
  }
}

module attributes {stable_mosaic.version = 11 : i64} {
  func.func @_linear_bn_act_kernel(%arg0: i32, %arg1: i32, %arg2: memref<8x256xf32, #tpu.memory_space<vmem>>, %arg3: memref<256x256xbf16, #tpu.memory_space<vmem>>, %arg4: memref<1x512xf32, #tpu.memory_space<vmem>>, %arg5: memref<1x512xf32, #tpu.memory_space<vmem>>, %arg6: memref<1x512xf32, #tpu.memory_space<vmem>>, %arg7: memref<8x256xf32, #tpu.memory_space<vmem>>, %arg8: memref<8x256xf32, #tpu.memory_space<vmem>>) attributes {dimension_semantics = [#tpu.dimension_semantics<parallel>, #tpu.dimension_semantics<arbitrary>], iteration_bounds = array<i64: 2, 1>, scalar_prefetch = 0 : i64, scratch_operands = 1 : i64, tpu.core_type = #tpu.core_type<tc>, window_params = [{pipeline_mode = #tpu.pipeline_mode<synchronous>, transform_indices = @transform_0, window_bounds = array<i64: 8, 256>}, {transform_indices = @transform_1, window_bounds = array<i64: 256, 256>}, {pipeline_mode = #tpu.pipeline_mode<synchronous>, transform_indices = @transform_2, window_bounds = array<i64: 1, 512>}, {pipeline_mode = #tpu.pipeline_mode<synchronous>, transform_indices = @transform_3, window_bounds = array<i64: 1, 512>}, {pipeline_mode = #tpu.pipeline_mode<synchronous>, transform_indices = @transform_4, window_bounds = array<i64: 1, 512>}, {transform_indices = @transform_5, window_bounds = array<i64: 8, 256>}]} {
    %c0_i32 = arith.constant 0 : i32
    %0 = arith.cmpi eq, %arg1, %c0_i32 : i32
    %1 = arith.extui %0 : i1 to i32
    %c0_i32_0 = arith.constant 0 : i32
    %2 = arith.cmpi ne, %1, %c0_i32_0 : i32
    scf.if %2 {
      %cst_9 = arith.constant 0.000000e+00 : f32
      %16 = vector.broadcast %cst_9 : f32 to vector<8x256xf32>
      %c0_10 = arith.constant 0 : index
      %c0_11 = arith.constant 0 : index
      %17 = vector.load %arg8[%c0_10, %c0_11] : memref<8x256xf32, #tpu.memory_space<vmem>>, vector<8x256xf32>
      tpu.vector_store %arg8[%c0_10, %c0_11], %16 {strides = array<i32>} : memref<8x256xf32, #tpu.memory_space<vmem>>, vector<8x256xf32>,
    } else {
    }
    %c256_i32 = arith.constant 256 : i32
    %3 = arith.muli %arg1, %c256_i32 : i32
    %4 = tpu.assume_multiple %3, 256 : i32
    %c0 = arith.constant 0 : index
    %5 = arith.index_cast %4 : i32 to index
    %6 = vector.load %arg2[%c0, %5] : memref<8x256xf32, #tpu.memory_space<vmem>>, vector<8x256xf32>
    %7 = arith.truncf %6 : vector<8x256xf32> to vector<8x256xbf16>
    %c0_1 = arith.constant 0 : index
    %c0_2 = arith.constant 0 : index
    %8 = vector.load %arg8[%c0_1, %c0_2] : memref<8x256xf32, #tpu.memory_space<vmem>>, vector<8x256xf32>
    %c0_3 = arith.constant 0 : index
    %c0_4 = arith.constant 0 : index
    %9 = vector.load %arg3[%c0_3, %c0_4] : memref<256x256xbf16, #tpu.memory_space<vmem>>, vector<256x256xbf16>
    %cst = arith.constant dense<0.000000e+00> : vector<8x256xf32>
    %10 = tpu.matmul %7, %9, %cst {dimension_numbers = #tpu.dot_dimension_numbers<[1], [0], [0], [1], [0, 0, 1, 1], [], []>} : vector<8x256xbf16>, vector<256x256xbf16>, vector<8x256xf32> -> vector<8x256xf32>
    %11 = arith.addf %8, %10 : vector<8x256xf32>
    %c0_5 = arith.constant 0 : index
    %c0_6 = arith.constant 0 : index
    %12 = vector.load %arg8[%c0_5, %c0_6] : memref<8x256xf32, #tpu.memory_space<vmem>>, vector<8x256xf32>
    tpu.vector_store %arg8[%c0_5, %c0_6], %11 {strides = array<i32>} : memref<8x256xf32, #tpu.memory_space<vmem>>, vector<8x256xf32>,
    %c0_i32_7 = arith.constant 0 : i32
    %13 = arith.cmpi eq, %arg1, %c0_i32_7 : i32
    %14 = arith.extui %13 : i1 to i32
    %c0_i32_8 = arith.constant 0 : i32
    %15 = arith.cmpi ne, %14, %c0_i32_8 : i32
    scf.if %15 {
      %c256_i32_9 = arith.constant 256 : i32
      %16 = arith.muli %arg0, %c256_i32_9 : i32
      %17 = tpu.assume_multiple %16, 256 : i32
      %c0_10 = arith.constant 0 : index
      %c0_11 = arith.constant 0 : index
      %18 = vector.load %arg8[%c0_10, %c0_11] : memref<8x256xf32, #tpu.memory_space<vmem>>, vector<8x256xf32>
      %c0_12 = arith.constant 0 : index
      %19 = arith.index_cast %17 : i32 to index
      %20 = vector.load %arg4[%c0_12, %19] : memref<1x512xf32, #tpu.memory_space<vmem>>, vector<1x256xf32>
      %21 = vector.broadcast %20 : vector<1x256xf32> to vector<8x256xf32>
      %22 = arith.addf %18, %21 : vector<8x256xf32>
      %23 = arith.negf %22 : vector<8x256xf32>
      %24 = math.exp %23 : vector<8x256xf32>
      %cst_13 = arith.constant 1.000000e+00 : f32
      %25 = vector.broadcast %cst_13 : f32 to vector<8x256xf32>
      %26 = arith.addf %25, %24 : vector<8x256xf32>
      %27 = arith.divf %25, %26 : vector<8x256xf32>
      %c0_14 = arith.constant 0 : index
      %c0_15 = arith.constant 0 : index
      %28 = vector.load %arg7[%c0_14, %c0_15] : memref<8x256xf32, #tpu.memory_space<vmem>>, vector<8x256xf32>
      tpu.vector_store %arg7[%c0_14, %c0_15], %27 {strides = array<i32>} : memref<8x256xf32, #tpu.memory_space<vmem>>, vector<8x256xf32>,
    } else {
    }
    return
  }
  func.func @transform_0(%arg0: i32, %arg1: i32) -> (i32, i32) {
    %c0_i32 = arith.constant 0 : i32
    %c0_i32_0 = arith.constant 0 : i32
    %c0_i32_1 = arith.constant 0 : i32
    return %c0_i32, %c0_i32_0 : i32, i32
  }
  func.func @transform_1(%arg0: i32, %arg1: i32) -> (i32, i32) {
    %c0_i32 = arith.constant 0 : i32
    return %arg1, %arg0 : i32, i32
  }
  func.func @transform_2(%arg0: i32, %arg1: i32) -> (i32, i32) {
    %c0_i32 = arith.constant 0 : i32
    %c0_i32_0 = arith.constant 0 : i32
    %c0_i32_1 = arith.constant 0 : i32
    return %c0_i32, %c0_i32_0 : i32, i32
  }
  func.func @transform_3(%arg0: i32, %arg1: i32) -> (i32, i32) {
    %c0_i32 = arith.constant 0 : i32
    %c0_i32_0 = arith.constant 0 : i32
    %c0_i32_1 = arith.constant 0 : i32
    return %c0_i32, %c0_i32_0 : i32, i32
  }
  func.func @transform_4(%arg0: i32, %arg1: i32) -> (i32, i32) {
    %c0_i32 = arith.constant 0 : i32
    %c0_i32_0 = arith.constant 0 : i32
    %c0_i32_1 = arith.constant 0 : i32
    return %c0_i32, %c0_i32_0 : i32, i32
  }
  func.func @transform_5(%arg0: i32, %arg1: i32) -> (i32, i32) {
    %c0_i32 = arith.constant 0 : i32
    %c0_i32_0 = arith.constant 0 : i32
    return %c0_i32, %arg0 : i32, i32
  }
}

</mosaic_0001>

<bundles_post_ra>
// kernel: autoencoder_forward.6
= control target key start
LH: loop header
LB: loop body
LE: loop exit
PB: predicated region body
PF: predicated region fallthrough
CT: control target
= control target key end

     0   :  { %s1259_s18 = smov 0   ;;  %s1261_s19 = smov 0   ;;  %s1518_s0 = inlined_call_operand.vmem [shape: f32[8,512], index: 0, kind: input, shape index: {}]   ;;  %s1519_s1 = inlined_call_operand.vmem [shape: bf16[512,256], index: 1, kind: input, shape index: {}]   ;;  %s1520_s2 = inlined_call_operand.vmem [shape: f32[1,256], index: 2, kind: input, shape index: {}]   ;;  %s1521_s3 = inlined_call_operand.vmem [shape: f32[1,256], index: 3, kind: input, shape index: {}]   ;;  %s1522_s4 = inlined_call_operand.vmem [shape: f32[1,256], index: 4, kind: input, shape index: {}]   ;;  %s1523_s5 = inlined_call_operand.vmem [shape: f32[8,256], index: 5, kind: output, shape index: {}]  }
   0x1   :  { %s1263_s20 = smov 0   ;;  %s1265_s21 = smov 0  }
   0x2   :  { %s1267_s22 = smov 0  }
   0x3 LB: > { %s27_s23 = sadd.s32 1, %s1223_s21  ;;  %p64_p1 = scmp.ne.s32.totalorder %s1215_s19, %s1211_s18  ;;  %s1227_s22 = sphi %s1267_s22, %s15_s22   ;;  %s1223_s21 = sphi %s1265_s21, %s1527_s21   ;;  %s1219_s20 = sphi %s1263_s20, %s1526_s20   ;;  %s1215_s19 = sphi %s1261_s19, %s1525_s19   ;;  %s1211_s18 = sphi %s1259_s18, %s1524_s18  }
   0x4   : > { %p29_p0 = scmp.ge.s32.totalorder %s27_s23, 2  ;;  %p65_p2 = scmp.eq.s32.totalorder %s1227_s22, 0 }
   0x5   : > { %s57_s25 = sadd.s32 1, %s1215_s19  ;;  %p1027_p5 = scmp.ge.s32.totalorder %s1227_s22, 2 }
   0x6   : > { %s1529_s23 = smov (%p29_p0, %s27_s23), 0  ;;  %p66_p3 = por %p65_p2, %p64_p1 }
   0x7   : > { %s53_s24 = ssub.s32 %s1223_s21, %s1529_s23  ;;  %191 = sbr.rel (%p1027_p5) target bundleno = 58 (0x3a), region = 32 }
   0x8   : > { %p55_p4 = scmp.eq.s32.totalorder %s53_s24, 0 }
   0xa   : > { %s1294_s26 = scalar_select %p55_p4, %s1215_s19, %s57_s25  }
   0xc   : > { %194 = sbr.rel (!%p66_p3) target bundleno = 58 (0x3a), region = 36  ;;  %s196_s27 = sand.u32 (%p66_p3), 1, %s1215_s19  }
   0xd   : > { %s1029_s28 = sshll.u32 (%p66_p3), %s1223_s21, 2  ;;  %s1028_s29 = sshll.u32 (%p66_p3), %s196_s27, 8 }
   0xe   : > { %s1302_s7 = scalar_lea.vmem (%p66_p3), %s1519_s1, %s1029_s28  ;;  %s1306_s8 = scalar_lea.vmem (%p66_p3), [#allocation3], %s1028_s29 }
   0xf   : > { %v220_v0 = vld [vmem:[%s1302_s7] sm:$0xf] (%p66_p3)  ;;  %v222_v1 = vld [vmem:[%s1302_s7 + $0x8] sm:$0xf] (%p66_p3)  ;;  %v224_v2 = vld [vmem:[%s1302_s7 + $0x10] sm:$0xf] (%p66_p3) }
  0x10   : > { %221 = vst [vmem:[%s1306_s8] sm:$0xf] (%p66_p3), %v220_v0  ;;  %223 = vst [vmem:[%s1306_s8 + $0x4] sm:$0xf] (%p66_p3), %v222_v1  ;;  %v226_v3 = vld [vmem:[%s1302_s7 + $0x18] sm:$0xf] (%p66_p3) }
  0x11   : > { %v228_v4 = vld [vmem:[%s1302_s7 + $0x20] sm:$0xf]  ;;  %225 = vst [vmem:[%s1306_s8 + $0x8] sm:$0xf] %v224_v2  ;;  %227 = vst [vmem:[%s1306_s8 + $0xc] sm:$0xf] %v226_v3 }
  0x12   : > { %229 = vst [vmem:[%s1306_s8 + $0x10] sm:$0xf] %v228_v4  ;;  %v230_v5 = vld [vmem:[%s1302_s7 + $0x28] sm:$0xf]  ;;  %v232_v6 = vld [vmem:[%s1302_s7 + $0x30] sm:$0xf] }
  0x13   : > { %v234_v7 = vld [vmem:[%s1302_s7 + $0x38] sm:$0xf]  ;;  %231 = vst [vmem:[%s1306_s8 + $0x14] sm:$0xf] %v230_v5  ;;  %233 = vst [vmem:[%s1306_s8 + $0x18] sm:$0xf] %v232_v6 }
  0x14   : > { %235 = vst [vmem:[%s1306_s8 + $0x1c] sm:$0xf] %v234_v7  ;;  %v236_v8 = vld [vmem:[%s1302_s7 + $0x40] sm:$0xf]  ;;  %v238_v9 = vld [vmem:[%s1302_s7 + $0x48] sm:$0xf] }
  0x15   : > { %v240_v10 = vld [vmem:[%s1302_s7 + $0x50] sm:$0xf]  ;;  %237 = vst [vmem:[%s1306_s8 + $0x20] sm:$0xf] %v236_v8  ;;  %239 = vst [vmem:[%s1306_s8 + $0x24] sm:$0xf] %v238_v9 }
  0x16   : > { %241 = vst [vmem:[%s1306_s8 + $0x28] sm:$0xf] %v240_v10  ;;  %v242_v11 = vld [vmem:[%s1302_s7 + $0x58] sm:$0xf]  ;;  %v244_v12 = vld [vmem:[%s1302_s7 + $0x60] sm:$0xf] }
  0x17   : > { %v246_v13 = vld [vmem:[%s1302_s7 + $0x68] sm:$0xf]  ;;  %243 = vst [vmem:[%s1306_s8 + $0x2c] sm:$0xf] %v242_v11  ;;  %245 = vst [vmem:[%s1306_s8 + $0x30] sm:$0xf] %v244_v12 }
  0x18   : > { %247 = vst [vmem:[%s1306_s8 + $0x34] sm:$0xf] %v246_v13  ;;  %v248_v14 = vld [vmem:[%s1302_s7 + $0x70] sm:$0xf]  ;;  %v250_v15 = vld [vmem:[%s1302_s7 + $0x78] sm:$0xf] }
  0x19   : > { %v252_v16 = vld [vmem:[%s1302_s7 + $0x80] sm:$0xf]  ;;  %249 = vst [vmem:[%s1306_s8 + $0x38] sm:$0xf] %v248_v14  ;;  %251 = vst [vmem:[%s1306_s8 + $0x3c] sm:$0xf] %v250_v15 }
  0x1a   : > { %253 = vst [vmem:[%s1306_s8 + $0x40] sm:$0xf] %v252_v16  ;;  %v254_v17 = vld [vmem:[%s1302_s7 + $0x88] sm:$0xf]  ;;  %v256_v18 = vld [vmem:[%s1302_s7 + $0x90] sm:$0xf] }
  0x1b   : > { %v258_v19 = vld [vmem:[%s1302_s7 + $0x98] sm:$0xf]  ;;  %255 = vst [vmem:[%s1306_s8 + $0x44] sm:$0xf] %v254_v17  ;;  %257 = vst [vmem:[%s1306_s8 + $0x48] sm:$0xf] %v256_v18 }
  0x1c   : > { %259 = vst [vmem:[%s1306_s8 + $0x4c] sm:$0xf] %v258_v19  ;;  %v260_v20 = vld [vmem:[%s1302_s7 + $0xa0] sm:$0xf]  ;;  %v262_v21 = vld [vmem:[%s1302_s7 + $0xa8] sm:$0xf] }
  0x1d   : > { %v264_v22 = vld [vmem:[%s1302_s7 + $0xb0] sm:$0xf]  ;;  %261 = vst [vmem:[%s1306_s8 + $0x50] sm:$0xf] %v260_v20  ;;  %263 = vst [vmem:[%s1306_s8 + $0x54] sm:$0xf] %v262_v21 }
  0x1e   : > { %265 = vst [vmem:[%s1306_s8 + $0x58] sm:$0xf] %v264_v22  ;;  %v266_v23 = vld [vmem:[%s1302_s7 + $0xb8] sm:$0xf]  ;;  %v268_v24 = vld [vmem:[%s1302_s7 + $0xc0] sm:$0xf] }
  0x1f   : > { %v270_v25 = vld [vmem:[%s1302_s7 + $0xc8] sm:$0xf]  ;;  %267 = vst [vmem:[%s1306_s8 + $0x5c] sm:$0xf] %v266_v23  ;;  %269 = vst [vmem:[%s1306_s8 + $0x60] sm:$0xf] %v268_v24 }
  0x20   : > { %271 = vst [vmem:[%s1306_s8 + $0x64] sm:$0xf] %v270_v25  ;;  %v272_v26 = vld [vmem:[%s1302_s7 + $0xd0] sm:$0xf]  ;;  %v274_v27 = vld [vmem:[%s1302_s7 + $0xd8] sm:$0xf] }
  0x21   : > { %v276_v28 = vld [vmem:[%s1302_s7 + $0xe0] sm:$0xf]  ;;  %273 = vst [vmem:[%s1306_s8 + $0x68] sm:$0xf] %v272_v26  ;;  %275 = vst [vmem:[%s1306_s8 + $0x6c] sm:$0xf] %v274_v27 }
  0x22   : > { %277 = vst [vmem:[%s1306_s8 + $0x70] sm:$0xf] %v276_v28  ;;  %v278_v29 = vld [vmem:[%s1302_s7 + $0xe8] sm:$0xf]  ;;  %v280_v30 = vld [vmem:[%s1302_s7 + $0xf0] sm:$0xf] }
  0x23   : > { %v282_v31 = vld [vmem:[%s1302_s7 + $0xf8] sm:$0xf]  ;;  %279 = vst [vmem:[%s1306_s8 + $0x74] sm:$0xf] %v278_v29  ;;  %281 = vst [vmem:[%s1306_s8 + $0x78] sm:$0xf] %v280_v30 }
  0x24   : > { %283 = vst [vmem:[%s1306_s8 + $0x7c] sm:$0xf] %v282_v31  ;;  %v284_v32 = vld [vmem:[%s1302_s7 + $0x100] sm:$0xf]  ;;  %v286_v33 = vld [vmem:[%s1302_s7 + $0x108] sm:$0xf] }
  0x25   : > { %v288_v34 = vld [vmem:[%s1302_s7 + $0x110] sm:$0xf]  ;;  %285 = vst [vmem:[%s1306_s8 + $0x80] sm:$0xf] %v284_v32  ;;  %287 = vst [vmem:[%s1306_s8 + $0x84] sm:$0xf] %v286_v33 }
  0x26   : > { %289 = vst [vmem:[%s1306_s8 + $0x88] sm:$0xf] %v288_v34  ;;  %v290_v35 = vld [vmem:[%s1302_s7 + $0x118] sm:$0xf]  ;;  %v292_v36 = vld [vmem:[%s1302_s7 + $0x120] sm:$0xf] }
  0x27   : > { %v294_v37 = vld [vmem:[%s1302_s7 + $0x128] sm:$0xf]  ;;  %291 = vst [vmem:[%s1306_s8 + $0x8c] sm:$0xf] %v290_v35  ;;  %293 = vst [vmem:[%s1306_s8 + $0x90] sm:$0xf] %v292_v36 }
  0x28   : > { %295 = vst [vmem:[%s1306_s8 + $0x94] sm:$0xf] %v294_v37  ;;  %v296_v38 = vld [vmem:[%s1302_s7 + $0x130] sm:$0xf]  ;;  %v298_v39 = vld [vmem:[%s1302_s7 + $0x138] sm:$0xf] }
  0x29   : > { %v300_v40 = vld [vmem:[%s1302_s7 + $0x140] sm:$0xf]  ;;  %297 = vst [vmem:[%s1306_s8 + $0x98] sm:$0xf] %v296_v38  ;;  %299 = vst [vmem:[%s1306_s8 + $0x9c] sm:$0xf] %v298_v39 }
  0x2a   : > { %301 = vst [vmem:[%s1306_s8 + $0xa0] sm:$0xf] %v300_v40  ;;  %v302_v41 = vld [vmem:[%s1302_s7 + $0x148] sm:$0xf]  ;;  %v304_v42 = vld [vmem:[%s1302_s7 + $0x150] sm:$0xf] }
  0x2b   : > { %v306_v43 = vld [vmem:[%s1302_s7 + $0x158] sm:$0xf]  ;;  %303 = vst [vmem:[%s1306_s8 + $0xa4] sm:$0xf] %v302_v41  ;;  %305 = vst [vmem:[%s1306_s8 + $0xa8] sm:$0xf] %v304_v42 }
  0x2c   : > { %307 = vst [vmem:[%s1306_s8 + $0xac] sm:$0xf] %v306_v43  ;;  %v308_v44 = vld [vmem:[%s1302_s7 + $0x160] sm:$0xf]  ;;  %v310_v45 = vld [vmem:[%s1302_s7 + $0x168] sm:$0xf] }
  0x2d   : > { %v312_v46 = vld [vmem:[%s1302_s7 + $0x170] sm:$0xf]  ;;  %309 = vst [vmem:[%s1306_s8 + $0xb0] sm:$0xf] %v308_v44  ;;  %311 = vst [vmem:[%s1306_s8 + $0xb4] sm:$0xf] %v310_v45 }
  0x2e   : > { %313 = vst [vmem:[%s1306_s8 + $0xb8] sm:$0xf] %v312_v46  ;;  %v314_v47 = vld [vmem:[%s1302_s7 + $0x178] sm:$0xf]  ;;  %v316_v48 = vld [vmem:[%s1302_s7 + $0x180] sm:$0xf] }
  0x2f   : > { %v318_v49 = vld [vmem:[%s1302_s7 + $0x188] sm:$0xf]  ;;  %315 = vst [vmem:[%s1306_s8 + $0xbc] sm:$0xf] %v314_v47  ;;  %317 = vst [vmem:[%s1306_s8 + $0xc0] sm:$0xf] %v316_v48 }
  0x30   : > { %319 = vst [vmem:[%s1306_s8 + $0xc4] sm:$0xf] %v318_v49  ;;  %v320_v50 = vld [vmem:[%s1302_s7 + $0x190] sm:$0xf]  ;;  %v322_v51 = vld [vmem:[%s1302_s7 + $0x198] sm:$0xf] }
  0x31   : > { %v324_v52 = vld [vmem:[%s1302_s7 + $0x1a0] sm:$0xf]  ;;  %321 = vst [vmem:[%s1306_s8 + $0xc8] sm:$0xf] %v320_v50  ;;  %323 = vst [vmem:[%s1306_s8 + $0xcc] sm:$0xf] %v322_v51 }
  0x32   : > { %325 = vst [vmem:[%s1306_s8 + $0xd0] sm:$0xf] %v324_v52  ;;  %v326_v53 = vld [vmem:[%s1302_s7 + $0x1a8] sm:$0xf]  ;;  %v328_v54 = vld [vmem:[%s1302_s7 + $0x1b0] sm:$0xf] }
  0x33   : > { %v330_v55 = vld [vmem:[%s1302_s7 + $0x1b8] sm:$0xf]  ;;  %327 = vst [vmem:[%s1306_s8 + $0xd4] sm:$0xf] %v326_v53  ;;  %329 = vst [vmem:[%s1306_s8 + $0xd8] sm:$0xf] %v328_v54 }
  0x34   : > { %331 = vst [vmem:[%s1306_s8 + $0xdc] sm:$0xf] %v330_v55  ;;  %v332_v56 = vld [vmem:[%s1302_s7 + $0x1c0] sm:$0xf]  ;;  %v334_v57 = vld [vmem:[%s1302_s7 + $0x1c8] sm:$0xf] }
  0x35   : > { %v336_v58 = vld [vmem:[%s1302_s7 + $0x1d0] sm:$0xf]  ;;  %333 = vst [vmem:[%s1306_s8 + $0xe0] sm:$0xf] %v332_v56  ;;  %335 = vst [vmem:[%s1306_s8 + $0xe4] sm:$0xf] %v334_v57 }
  0x36   : > { %337 = vst [vmem:[%s1306_s8 + $0xe8] sm:$0xf] %v336_v58  ;;  %v338_v59 = vld [vmem:[%s1302_s7 + $0x1d8] sm:$0xf]  ;;  %v340_v60 = vld [vmem:[%s1302_s7 + $0x1e0] sm:$0xf] }
  0x37   : > { %v342_v61 = vld [vmem:[%s1302_s7 + $0x1e8] sm:$0xf]  ;;  %339 = vst [vmem:[%s1306_s8 + $0xec] sm:$0xf] %v338_v59  ;;  %341 = vst [vmem:[%s1306_s8 + $0xf0] sm:$0xf] %v340_v60 }
  0x38   : > { %343 = vst [vmem:[%s1306_s8 + $0xf4] sm:$0xf] %v342_v61  ;;  %v344_v62 = vld [vmem:[%s1302_s7 + $0x1f0] sm:$0xf]  ;;  %v346_v63 = vld [vmem:[%s1302_s7 + $0x1f8] sm:$0xf] }
  0x39   : > { %345 = vst [vmem:[%s1306_s8 + $0xf8] sm:$0xf] %v344_v62  ;;  %347 = vst [vmem:[%s1306_s8 + $0xfc] sm:$0xf] %v346_v63 }
  0x3a PF: > { %p1030_p6 = scmp.ge.s32.totalorder %s1227_s22, 1  ;;  %p498_p7 = scmp.lt.s32.totalorder %s1227_s22, 3 }
  0x3c   : > { %p499_p8 = pnand %p1030_p6, %p498_p7 }
  0x3d   : > { %s505_s9 = sand.u32 (!%p499_p8), 1, %s1211_s18   ;;  %s1065_s25 = sshll.u32 (!%p499_p8), %s1219_s20, 7 }
  0x3e   : > { %502 = sbr.rel (%p499_p8) target bundleno = 361 (0x169), region = 77  ;;  %s1031_s14 = sshll.u32 (!%p499_p8), %s505_s9, 8 }
  0x3f   : > { %s1443_s15 = scalar_lea.vmem (!%p499_p8), [#allocation3], %s1031_s14  ;;  %s1484_s27 = sshra.s32 (!%p499_p8), %s1065_s25, 7 }
  0x40   : > { %s901_s30 = scalar_lea.vmem (!%p499_p8), %s1520_s2, %s1484_s27  ;;  %p532_p9 = scmp.lt.s32.totalorder (!%p499_p8), %s1219_s20, 1 }
  0x41   : > { %s930_s8 = scalar_lea.vmem (!%p499_p8), %s1521_s3, %s1484_s27  ;;  %s939_s11 = scalar_lea.vmem (!%p499_p8), %s1522_s4, %s1484_s27 }
  0x43   : > { %v548_v0 = vld [vmem:[%s1518_s0 + $0x8] sm:$0xff]  ;;  %v550_v1 = vld [vmem:[%s1518_s0 + $0x18] sm:$0xff]  ;;  %v1159_v8 = vld [vmem:[%s1443_s15 + $0x70] sm:$0xff]   ;;  %s1531_s20 = smov (!%p532_p9, %s1219_s20), 1 }
  0x44   : > { %v552_v2 = vpack.c.bf16 %v548_v0, %v548_v0  ;;  %v554_v3 = vpack.c.bf16 %v550_v1, %v550_v1  ;;  %v1155_v4 = vld [vmem:[%s1443_s15 + $0x78] sm:$0xff]   ;;  %v1160_v9 = vld [vmem:[%s1443_s15 + $0xf0] sm:$0xff]   ;;  %v1163_v12 = vld [vmem:[%s1443_s15 + $0x68] sm:$0xff]   ;;  %s1032_s12 = sshll.u32 %s1531_s20, 3 }
  0x45   : > { %v1156_v5 = vld [vmem:[%s1443_s15 + $0xf8] sm:$0xff]   ;;  %1071 = vmatprep.subr.bf16.mxu0 %v1155_v4  ;;  %v1161_v10 = vld [vmem:[%s1443_s15 + $0x30] sm:$0xff]   ;;  %v1164_v13 = vld [vmem:[%s1443_s15 + $0xe8] sm:$0xff]  }
  0x46   : > { %844 = vmatprep.mubr.bf16.mxu0 %v552_v2  ;;  %884 = vmatprep.mubr.bf16.mxu1 %v554_v3  ;;  %v1157_v6 = vld [vmem:[%s1443_s15 + $0x38] sm:$0xff]   ;;  %v1162_v11 = vld [vmem:[%s1443_s15 + $0xb0] sm:$0xff]   ;;  %v1165_v14 = vld [vmem:[%s1443_s15 + $0x28] sm:$0xff]  }
  0x47   : > { %1093 = vmatprep.subr.bf16.mxu1 %v1156_v5  ;;  %v1158_v7 = vld [vmem:[%s1443_s15 + $0xb8] sm:$0xff]   ;;  %1072 = vmatpush3.bf16.msra.mxu0 %v1157_v6  ;;  %v1166_v15 = vld [vmem:[%s1443_s15 + $0xa8] sm:$0xff]   ;;  %v1167_v16 = vld [vmem:[%s1443_s15 + $0x60] sm:$0xff]  }
  0x48   : > { %1094 = vmatpush3.bf16.msra.mxu1 %v1158_v7  ;;  %1073 = vmatprep.subr.bf16.mxu0 %v1159_v8  ;;  %v1168_v17 = vld [vmem:[%s1443_s15 + $0xe0] sm:$0xff]   ;;  %v1171_v20 = vld [vmem:[%s1443_s15 + $0x58] sm:$0xff]   ;;  %v1175_v24 = vld [vmem:[%s1443_s15 + $0x50] sm:$0xff]  }
  0x49   : > { %1095 = vmatprep.subr.bf16.mxu1 %v1160_v9  ;;  %v1169_v18 = vld [vmem:[%s1443_s15 + $0x20] sm:$0xff]   ;;  %v1172_v21 = vld [vmem:[%s1443_s15 + $0xd8] sm:$0xff]   ;;  %v1176_v25 = vld [vmem:[%s1443_s15 + $0xd0] sm:$0xff]  }
  0x4a   : > { %v1170_v19 = vld [vmem:[%s1443_s15 + $0xa0] sm:$0xff]   ;;  %v1173_v22 = vld [vmem:[%s1443_s15 + $0x18] sm:$0xff]   ;;  %v1177_v26 = vld [vmem:[%s1443_s15 + $0x10] sm:$0xff]  }
  0x4b   : > { %1074 = vmatpush3.bf16.msra.mxu0 %v1161_v10  ;;  %v1174_v23 = vld [vmem:[%s1443_s15 + $0x98] sm:$0xff]   ;;  %v1178_v27 = vld [vmem:[%s1443_s15 + $0x90] sm:$0xff]   ;;  %v1179_v28 = vld [vmem:[%s1443_s15 + $0x48] sm:$0xff]  }
  0x4c   : > { %1096 = vmatpush3.bf16.msra.mxu1 %v1162_v11  ;;  %1075 = vmatprep.subr.bf16.mxu0 %v1163_v12  ;;  %v1180_v29 = vld [vmem:[%s1443_s15 + $0xc8] sm:$0xff]   ;;  %v547_v31 = vld [vmem:[%s1518_s0] sm:$0xff]  ;;  %v549_v33 = vld [vmem:[%s1518_s0 + $0x10] sm:$0xff] }
  0x4d   : > { %1097 = vmatprep.subr.bf16.mxu1 %v1164_v13  ;;  %v1181_v30 = vld [vmem:[%s1443_s15 + $0x8] sm:$0xff]   ;;  %v1183_v34 = vld [vmem:[%s1443_s15 + $0x40] sm:$0xff]   ;;  %v551_v38 = vpack.c.bf16 %v547_v31, %v547_v31  ;;  %v553_v39 = vpack.c.bf16 %v549_v33, %v549_v33 }
  0x4e   : > { %v1182_v32 = vld [vmem:[%s1443_s15 + $0x88] sm:$0xff]   ;;  %v1184_v35 = vld [vmem:[%s1443_s15 + $0xc0] sm:$0xff]  }
  0x4f   : > { %1076 = vmatpush3.bf16.msra.mxu0 %v1165_v14  ;;  %v1185_v36 = vld [vmem:[%s1443_s15] sm:$0xff]  }
  0x50   : > { %1098 = vmatpush3.bf16.msra.mxu1 %v1166_v15  ;;  %1077 = vmatprep.subr.bf16.mxu0 %v1167_v16  ;;  %v1186_v37 = vld [vmem:[%s1443_s15 + $0x80] sm:$0xff]   ;;  %s535_s15 = scalar_lea.vmem %s1523_s5, %s1032_s12 }
  0x51   : > { %1099 = vmatprep.subr.bf16.mxu1 %v1168_v17  ;;  %v1066_v47 = vld [vmem:[%s901_s30] ss:$0 sm:$0xff] }
  0x52   : > { %v1067_v7 = vld [vmem:[%s930_s8] ss:$0 sm:$0xff] }
  0x53   : > { %1078 = vmatpush3.bf16.msra.mxu0 %v1169_v18  ;;  %v1068_v9 = vld [vmem:[%s939_s11] ss:$0 sm:$0xff] }
  0x54   : > { %1100 = vmatpush3.bf16.msra.mxu1 %v1170_v19  ;;  %1079 = vmatprep.subr.bf16.mxu0 %v1171_v20 }
  0x55   : > { %1101 = vmatprep.subr.bf16.mxu1 %v1172_v21 }
  0x57   : > { %1080 = vmatpush3.bf16.msra.mxu0 %v1173_v22 }
  0x58   : > { %1102 = vmatpush3.bf16.msra.mxu1 %v1174_v23  ;;  %1081 = vmatprep.subr.bf16.mxu0 %v1175_v24 }
  0x59   : > { %1103 = vmatprep.subr.bf16.mxu1 %v1176_v25 }
  0x5b   : > { %1082 = vmatpush3.bf16.msra.mxu0 %v1177_v26 }
  0x5c   : > { %1104 = vmatpush3.bf16.msra.mxu1 %v1178_v27  ;;  %1083 = vmatprep.subr.bf16.mxu0 %v1179_v28 }
  0x5d   : > { %1105 = vmatprep.subr.bf16.mxu1 %v1180_v29 }
  0x5f   : > { %1084 = vmatpush3.bf16.msra.mxu0 %v1181_v30 }
  0x60   : > { %1106 = vmatpush3.bf16.msra.mxu1 %v1182_v32  ;;  %1085 = vmatprep.subr.bf16.mxu0 %v1183_v34 }
  0x61   : > { %1107 = vmatprep.subr.bf16.mxu1 %v1184_v35 }
  0x63   : > { %1086 = vmatpush3.bf16.msra.mxu0 %v1185_v36 }
  0x64   : > { %1108 = vmatpush3.bf16.msra.mxu1 %v1186_v37 }
  0x66   : > { %845 = vmatmul.mubr.bf16.vlgmr.msra.gmra.mxu0 %v551_v38 }
  0x67   : > { %885 = vmatmul.mubr.bf16.vlgmr.msra.gmra.mxu1 %v553_v39 }
 0x126   : > { %v1087_v40 = vpop.f32.mrf.mxu0 }
 0x127   : > { %v1109_v41 = vpop.f32.mrf.mxu1 }
 0x128   : > { %v1088_v42 = vpop.f32.mrf.mxu0 }
 0x129   : > { %v1089_v43 = vadd.f32 %v1088_v42, %v1087_v40  ;;  %v1110_v44 = vpop.f32.mrf.mxu1 }
 0x12a   : > { %v1111_v45 = vadd.f32 %v1110_v44, %v1109_v41  ;;  %v1090_v46 = vpop.f32.mrf.mxu0 }
 0x12b   : > { %v1112_v48 = vpop.f32.mrf.mxu1 }
 0x12c   : > { %v887_v49 = vadd.f32 %v1111_v45, %v1089_v43  ;;  %v1091_v50 = vpop.f32.mrf.mxu0 }
 0x12d   : > { %v1113_v51 = vpop.f32.mrf.mxu1 }
 0x12e   : > { %v909_v52 = vadd.f32 %v1066_v47, %v887_v49 }
 0x130   : > { %v910_v53 = vrot.slane %v909_v52, 4 }
 0x132   : > { %v911_v54 = vadd.f32 %v910_v53, %v909_v52 }
 0x134   : > { %v912_v55 = vrot.slane %v911_v54, 2 }
 0x136   : > { %v913_v56 = vadd.f32 %v912_v55, %v911_v54 }
 0x138   : > { %v914_v57 = vrot.slane %v913_v56, 1 }
 0x13a   : > { %v915_v58 = vadd.f32 %v914_v57, %v913_v56 }
 0x13c   : > { %v917_v59 = vmul.f32 0.125, %v915_v58 }
 0x13e   : > { %v918_v60 = vsub.f32 %v909_v52, %v917_v59 }
 0x140   : > { %v919_v61 = vmul.f32 %v918_v60, %v918_v60 }
 0x142   : > { %v920_v62 = vrot.slane %v919_v61, 4 }
 0x144   : > { %v921_v63 = vadd.f32 %v920_v62, %v919_v61 }
 0x146   : > { %v922_v0 = vrot.slane %v921_v63, 2 }
 0x148   : > { %v923_v1 = vadd.f32 %v922_v0, %v921_v63 }
 0x14a   : > { %v924_v2 = vrot.slane %v923_v1, 1 }
 0x14c   : > { %v925_v3 = vadd.f32 %v924_v2, %v923_v1 }
 0x14e   : > { %v926_v4 = vmul.f32 0.125, %v925_v3 }
 0x150   : > { %v927_v5 = vadd.f32 1e-05, %v926_v4 }
 0x152   : > { %1187 = vrsqrt.f32 %v927_v5 }
 0x15f   : > { %v1188_v6 = vpop.eup %1187 }
 0x160   : > { %v929_v8 = vmul.f32 %v1188_v6, %v918_v60 }
 0x162   : > { %v938_v10 = vmul.f32 %v1067_v7, %v929_v8 }
 0x164   : > { %v947_v11 = vadd.f32 %v1068_v9, %v938_v10 }
 0x166   : > { %v948_v12 = vmax.f32 %v947_v11, 0.0 }
 0x168   : > { %949 = vst [vmem:[%s535_s15] sm:$0xff] %v948_v12 }
 0x169 PF: > { %s15_s22 = sadd.s32 1, %s1227_s22   ;;  %s1524_s18 = smov %s1215_s19 }
 0x16a   : > { %p12_p10 = scmp.ge.s32.totalorder %s15_s22, 4   ;;  %s1525_s19 = smov %s1294_s26 }
 0x16b   : > { %s1526_s20 = smov %s1223_s21  ;;  %s1527_s21 = smov %s1529_s23 }
 0x16c   :  { %14 = sbr.rel (!%p12_p10) target bundleno = 3 (0x3), region = 128 }

// kernel: autoencoder_forward.7
= control target key start
LH: loop header
LB: loop body
LE: loop exit
PB: predicated region body
PF: predicated region fallthrough
CT: control target
= control target key end

     0   :  { %s905_s18 = smov 0   ;;  %s907_s19 = smov 0   ;;  %s1078_s0 = inlined_call_operand.vmem [shape: f32[8,256], index: 0, kind: input, shape index: {}]   ;;  %s1079_s1 = inlined_call_operand.vmem [shape: bf16[256,256], index: 1, kind: input, shape index: {}]   ;;  %s1080_s2 = inlined_call_operand.vmem [shape: f32[1,256], index: 2, kind: input, shape index: {}]   ;;  %s1081_s3 = inlined_call_operand.vmem [shape: f32[1,256], index: 3, kind: input, shape index: {}]   ;;  %s1082_s4 = inlined_call_operand.vmem [shape: f32[1,256], index: 4, kind: input, shape index: {}]   ;;  %s1083_s5 = inlined_call_operand.vmem [shape: f32[8,256], index: 5, kind: output, shape index: {}]  }
   0x1   :  { %s909_s20 = smov 0   ;;  %s911_s21 = smov 0  }
   0x2   :  { %s913_s22 = smov 0  }
   0x3 LB: > { %s27_s23 = sadd.s32 1, %s869_s21  ;;  %p64_p1 = scmp.ne.s32.totalorder %s861_s19, %s857_s18  ;;  %s873_s22 = sphi %s913_s22, %s15_s22   ;;  %s869_s21 = sphi %s911_s21, %s1087_s21   ;;  %s865_s20 = sphi %s909_s20, %s1086_s20   ;;  %s861_s19 = sphi %s907_s19, %s1085_s19   ;;  %s857_s18 = sphi %s905_s18, %s1084_s18  }
   0x4   : > { %p29_p0 = scmp.ge.s32.totalorder %s27_s23, 2  ;;  %p65_p2 = scmp.eq.s32.totalorder %s873_s22, 0 }
   0x5   : > { %s57_s25 = sadd.s32 1, %s861_s19  ;;  %p727_p5 = scmp.ge.s32.totalorder %s873_s22, 2 }
   0x6   : > { %s1089_s23 = smov (%p29_p0, %s27_s23), 0  ;;  %p66_p3 = por %p65_p2, %p64_p1 }
   0x7   : > { %s53_s24 = ssub.s32 %s869_s21, %s1089_s23  ;;  %191 = sbr.rel (%p727_p5) target bundleno = 37 (0x25), region = 32 }
   0x8   : > { %p55_p4 = scmp.eq.s32.totalorder %s53_s24, 0 }
   0xa   : > { %s940_s26 = scalar_select %p55_p4, %s861_s19, %s57_s25  }
   0xc   : > { %194 = sbr.rel (!%p66_p3) target bundleno = 37 (0x25), region = 36  ;;  %s196_s27 = sand.u32 (%p66_p3), 1, %s861_s19  }
   0xd   : > { %s729_s28 = sshll.u32 (%p66_p3), %s869_s21, 2  ;;  %s728_s29 = sshll.u32 (%p66_p3), %s196_s27, 7 }
   0xe   : > { %s948_s7 = scalar_lea.vmem (%p66_p3), %s1079_s1, %s729_s28  ;;  %s952_s8 = scalar_lea.vmem (%p66_p3), [#allocation3], %s728_s29 }
   0xf   : > { %v220_v0 = vld [vmem:[%s948_s7] sm:$0xf] (%p66_p3)  ;;  %v222_v1 = vld [vmem:[%s948_s7 + $0x8] sm:$0xf] (%p66_p3)  ;;  %v224_v2 = vld [vmem:[%s948_s7 + $0x10] sm:$0xf] (%p66_p3) }
  0x10   : > { %221 = vst [vmem:[%s952_s8] sm:$0xf] (%p66_p3), %v220_v0  ;;  %223 = vst [vmem:[%s952_s8 + $0x4] sm:$0xf] (%p66_p3), %v222_v1  ;;  %v226_v3 = vld [vmem:[%s948_s7 + $0x18] sm:$0xf] (%p66_p3) }
  0x11   : > { %v228_v4 = vld [vmem:[%s948_s7 + $0x20] sm:$0xf]  ;;  %225 = vst [vmem:[%s952_s8 + $0x8] sm:$0xf] %v224_v2  ;;  %227 = vst [vmem:[%s952_s8 + $0xc] sm:$0xf] %v226_v3 }
  0x12   : > { %229 = vst [vmem:[%s952_s8 + $0x10] sm:$0xf] %v228_v4  ;;  %v230_v5 = vld [vmem:[%s948_s7 + $0x28] sm:$0xf]  ;;  %v232_v6 = vld [vmem:[%s948_s7 + $0x30] sm:$0xf] }
  0x13   : > { %v234_v7 = vld [vmem:[%s948_s7 + $0x38] sm:$0xf]  ;;  %231 = vst [vmem:[%s952_s8 + $0x14] sm:$0xf] %v230_v5  ;;  %233 = vst [vmem:[%s952_s8 + $0x18] sm:$0xf] %v232_v6 }
  0x14   : > { %235 = vst [vmem:[%s952_s8 + $0x1c] sm:$0xf] %v234_v7  ;;  %v236_v8 = vld [vmem:[%s948_s7 + $0x40] sm:$0xf]  ;;  %v238_v9 = vld [vmem:[%s948_s7 + $0x48] sm:$0xf] }
  0x15   : > { %v240_v10 = vld [vmem:[%s948_s7 + $0x50] sm:$0xf]  ;;  %237 = vst [vmem:[%s952_s8 + $0x20] sm:$0xf] %v236_v8  ;;  %239 = vst [vmem:[%s952_s8 + $0x24] sm:$0xf] %v238_v9 }
  0x16   : > { %241 = vst [vmem:[%s952_s8 + $0x28] sm:$0xf] %v240_v10  ;;  %v242_v11 = vld [vmem:[%s948_s7 + $0x58] sm:$0xf]  ;;  %v244_v12 = vld [vmem:[%s948_s7 + $0x60] sm:$0xf] }
  0x17   : > { %v246_v13 = vld [vmem:[%s948_s7 + $0x68] sm:$0xf]  ;;  %243 = vst [vmem:[%s952_s8 + $0x2c] sm:$0xf] %v242_v11  ;;  %245 = vst [vmem:[%s952_s8 + $0x30] sm:$0xf] %v244_v12 }
  0x18   : > { %247 = vst [vmem:[%s952_s8 + $0x34] sm:$0xf] %v246_v13  ;;  %v248_v14 = vld [vmem:[%s948_s7 + $0x70] sm:$0xf]  ;;  %v250_v15 = vld [vmem:[%s948_s7 + $0x78] sm:$0xf] }
  0x19   : > { %v252_v16 = vld [vmem:[%s948_s7 + $0x80] sm:$0xf]  ;;  %249 = vst [vmem:[%s952_s8 + $0x38] sm:$0xf] %v248_v14  ;;  %251 = vst [vmem:[%s952_s8 + $0x3c] sm:$0xf] %v250_v15 }
  0x1a   : > { %253 = vst [vmem:[%s952_s8 + $0x40] sm:$0xf] %v252_v16  ;;  %v254_v17 = vld [vmem:[%s948_s7 + $0x88] sm:$0xf]  ;;  %v256_v18 = vld [vmem:[%s948_s7 + $0x90] sm:$0xf] }
  0x1b   : > { %v258_v19 = vld [vmem:[%s948_s7 + $0x98] sm:$0xf]  ;;  %255 = vst [vmem:[%s952_s8 + $0x44] sm:$0xf] %v254_v17  ;;  %257 = vst [vmem:[%s952_s8 + $0x48] sm:$0xf] %v256_v18 }
  0x1c   : > { %259 = vst [vmem:[%s952_s8 + $0x4c] sm:$0xf] %v258_v19  ;;  %v260_v20 = vld [vmem:[%s948_s7 + $0xa0] sm:$0xf]  ;;  %v262_v21 = vld [vmem:[%s948_s7 + $0xa8] sm:$0xf] }
  0x1d   : > { %v264_v22 = vld [vmem:[%s948_s7 + $0xb0] sm:$0xf]  ;;  %261 = vst [vmem:[%s952_s8 + $0x50] sm:$0xf] %v260_v20  ;;  %263 = vst [vmem:[%s952_s8 + $0x54] sm:$0xf] %v262_v21 }
  0x1e   : > { %265 = vst [vmem:[%s952_s8 + $0x58] sm:$0xf] %v264_v22  ;;  %v266_v23 = vld [vmem:[%s948_s7 + $0xb8] sm:$0xf]  ;;  %v268_v24 = vld [vmem:[%s948_s7 + $0xc0] sm:$0xf] }
  0x1f   : > { %v270_v25 = vld [vmem:[%s948_s7 + $0xc8] sm:$0xf]  ;;  %267 = vst [vmem:[%s952_s8 + $0x5c] sm:$0xf] %v266_v23  ;;  %269 = vst [vmem:[%s952_s8 + $0x60] sm:$0xf] %v268_v24 }
  0x20   : > { %271 = vst [vmem:[%s952_s8 + $0x64] sm:$0xf] %v270_v25  ;;  %v272_v26 = vld [vmem:[%s948_s7 + $0xd0] sm:$0xf]  ;;  %v274_v27 = vld [vmem:[%s948_s7 + $0xd8] sm:$0xf] }
  0x21   : > { %v276_v28 = vld [vmem:[%s948_s7 + $0xe0] sm:$0xf]  ;;  %273 = vst [vmem:[%s952_s8 + $0x68] sm:$0xf] %v272_v26  ;;  %275 = vst [vmem:[%s952_s8 + $0x6c] sm:$0xf] %v274_v27 }
  0x22   : > { %277 = vst [vmem:[%s952_s8 + $0x70] sm:$0xf] %v276_v28  ;;  %v278_v29 = vld [vmem:[%s948_s7 + $0xe8] sm:$0xf]  ;;  %v280_v30 = vld [vmem:[%s948_s7 + $0xf0] sm:$0xf] }
  0x23   : > { %v282_v31 = vld [vmem:[%s948_s7 + $0xf8] sm:$0xf]  ;;  %279 = vst [vmem:[%s952_s8 + $0x74] sm:$0xf] %v278_v29  ;;  %281 = vst [vmem:[%s952_s8 + $0x78] sm:$0xf] %v280_v30 }
  0x24   : > { %283 = vst [vmem:[%s952_s8 + $0x7c] sm:$0xf] %v282_v31 }
  0x25 PF: > { %p730_p6 = scmp.ge.s32.totalorder %s873_s22, 1  ;;  %p370_p7 = scmp.lt.s32.totalorder %s873_s22, 3 }
  0x27   : > { %p371_p8 = pnand %p730_p6, %p370_p7 }
  0x28   : > { %s377_s9 = sand.u32 (!%p371_p8), 1, %s857_s18   ;;  %s749_s16 = sshll.u32 (!%p371_p8), %s865_s20, 7 }
  0x29   : > { %374 = sbr.rel (%p371_p8) target bundleno = 335 (0x14f), region = 77  ;;  %s731_s12 = sshll.u32 (!%p371_p8), %s377_s9, 7 }
  0x2a   : > { %s1022_s13 = scalar_lea.vmem (!%p371_p8), [#allocation3], %s731_s12  ;;  %s1044_s17 = sshra.s32 (!%p371_p8), %s749_s16, 7 }
  0x2b   : > { %s601_s25 = scalar_lea.vmem (!%p371_p8), %s1080_s2, %s1044_s17  ;;  %p404_p9 = scmp.lt.s32.totalorder (!%p371_p8), %s865_s20, 1 }
  0x2c   : > { %s630_s29 = scalar_lea.vmem (!%p371_p8), %s1081_s3, %s1044_s17  ;;  %s639_s7 = scalar_lea.vmem (!%p371_p8), %s1082_s4, %s1044_s17 }
  0x2e   : > { %v420_v32 = vld [vmem:[%s1078_s0 + $0x8] sm:$0xff]  ;;  %v817_v34 = vld [vmem:[%s1022_s13 + $0x78] sm:$0xff]   ;;  %v819_v36 = vld [vmem:[%s1022_s13 + $0x70] sm:$0xff]   ;;  %s1091_s20 = smov (!%p404_p9, %s865_s20), 1 }
  0x2f   : > { %v422_v33 = vpack.c.bf16 %v420_v32, %v420_v32  ;;  %v818_v35 = vld [vmem:[%s1022_s13 + $0x38] sm:$0xff]   ;;  %755 = vmatprep.subr.bf16.mxu0 %v817_v34  ;;  %v820_v37 = vld [vmem:[%s1022_s13 + $0x30] sm:$0xff]   ;;  %v821_v38 = vld [vmem:[%s1022_s13 + $0x68] sm:$0xff]   ;;  %s732_s8 = sshll.u32 %s1091_s20, 3 }
  0x30   : > { %756 = vmatpush3.bf16.msra.mxu0 %v818_v35  ;;  %v822_v39 = vld [vmem:[%s1022_s13 + $0x28] sm:$0xff]   ;;  %v823_v40 = vld [vmem:[%s1022_s13 + $0x60] sm:$0xff]   ;;  %v825_v42 = vld [vmem:[%s1022_s13 + $0x58] sm:$0xff]   ;;  %s407_s11 = scalar_lea.vmem %s1083_s5, %s732_s8 }
  0x31   : > { %584 = vmatprep.mubr.bf16.mxu0 %v422_v33  ;;  %757 = vmatprep.subr.bf16.mxu0 %v819_v36  ;;  %v824_v41 = vld [vmem:[%s1022_s13 + $0x20] sm:$0xff]   ;;  %v826_v43 = vld [vmem:[%s1022_s13 + $0x18] sm:$0xff]   ;;  %v827_v44 = vld [vmem:[%s1022_s13 + $0x50] sm:$0xff]  }
  0x32   : > { %v828_v45 = vld [vmem:[%s1022_s13 + $0x10] sm:$0xff]   ;;  %v829_v46 = vld [vmem:[%s1022_s13 + $0x48] sm:$0xff]   ;;  %v831_v48 = vld [vmem:[%s1022_s13 + $0x40] sm:$0xff]  }
  0x33   : > { %v830_v47 = vld [vmem:[%s1022_s13 + $0x8] sm:$0xff]   ;;  %v832_v49 = vld [vmem:[%s1022_s13] sm:$0xff]  }
  0x34   : > { %758 = vmatpush3.bf16.msra.mxu0 %v820_v37  ;;  %v419_v50 = vld [vmem:[%s1078_s0] sm:$0xff] }
  0x35   : > { %759 = vmatprep.subr.bf16.mxu0 %v821_v38  ;;  %v421_v51 = vpack.c.bf16 %v419_v50, %v419_v50  ;;  %v750_v54 = vld [vmem:[%s601_s25] ss:$0 sm:$0xff] }
  0x36   : > { %v751_v13 = vld [vmem:[%s630_s29] ss:$0 sm:$0xff] }
  0x37   : > { %v752_v15 = vld [vmem:[%s639_s7] ss:$0 sm:$0xff] }
  0x38   : > { %760 = vmatpush3.bf16.msra.mxu0 %v822_v39 }
  0x39   : > { %761 = vmatprep.subr.bf16.mxu0 %v823_v40 }
  0x3c   : > { %762 = vmatpush3.bf16.msra.mxu0 %v824_v41 }
  0x3d   : > { %763 = vmatprep.subr.bf16.mxu0 %v825_v42 }
  0x40   : > { %764 = vmatpush3.bf16.msra.mxu0 %v826_v43 }
  0x41   : > { %765 = vmatprep.subr.bf16.mxu0 %v827_v44 }
  0x44   : > { %766 = vmatpush3.bf16.msra.mxu0 %v828_v45 }
  0x45   : > { %767 = vmatprep.subr.bf16.mxu0 %v829_v46 }
  0x48   : > { %768 = vmatpush3.bf16.msra.mxu0 %v830_v47 }
  0x49   : > { %769 = vmatprep.subr.bf16.mxu0 %v831_v48 }
  0x4c   : > { %770 = vmatpush3.bf16.msra.mxu0 %v832_v49 }
  0x4f   : > { %585 = vmatmul.mubr.bf16.vlgmr.msra.gmra.mxu0 %v421_v51 }
 0x10f   : > { %v771_v52 = vpop.f32.mrf.mxu0 }
 0x111   : > { %v772_v53 = vpop.f32.mrf.mxu0 }
 0x112   : > { %v773_v55 = vadd.f32 %v772_v53, %v771_v52 }
 0x113   : > { %v774_v56 = vpop.f32.mrf.mxu0 }
 0x114   : > { %v609_v57 = vadd.f32 %v773_v55, %v750_v54 }
 0x115   : > { %v775_v58 = vpop.f32.mrf.mxu0 }
 0x116   : > { %v610_v59 = vrot.slane %v609_v57, 4 }
 0x118   : > { %v611_v60 = vadd.f32 %v610_v59, %v609_v57 }
 0x11a   : > { %v612_v61 = vrot.slane %v611_v60, 2 }
 0x11c   : > { %v613_v62 = vadd.f32 %v612_v61, %v611_v60 }
 0x11e   : > { %v614_v63 = vrot.slane %v613_v62, 1 }
 0x120   : > { %v615_v0 = vadd.f32 %v614_v63, %v613_v62 }
 0x122   : > { %v617_v1 = vmul.f32 0.125, %v615_v0 }
 0x124   : > { %v618_v2 = vsub.f32 %v609_v57, %v617_v1 }
 0x126   : > { %v619_v3 = vmul.f32 %v618_v2, %v618_v2 }
 0x128   : > { %v620_v4 = vrot.slane %v619_v3, 4 }
 0x12a   : > { %v621_v5 = vadd.f32 %v620_v4, %v619_v3 }
 0x12c   : > { %v622_v6 = vrot.slane %v621_v5, 2 }
 0x12e   : > { %v623_v7 = vadd.f32 %v622_v6, %v621_v5 }
 0x130   : > { %v624_v8 = vrot.slane %v623_v7, 1 }
 0x132   : > { %v625_v9 = vadd.f32 %v624_v8, %v623_v7 }
 0x134   : > { %v626_v10 = vmul.f32 0.125, %v625_v9 }
 0x136   : > { %v627_v11 = vadd.f32 1e-05, %v626_v10 }
 0x138   : > { %833 = vrsqrt.f32 %v627_v11 }
 0x145   : > { %v834_v12 = vpop.eup %833 }
 0x146   : > { %v629_v14 = vmul.f32 %v834_v12, %v618_v2 }
 0x148   : > { %v638_v16 = vmul.f32 %v751_v13, %v629_v14 }
 0x14a   : > { %v647_v17 = vadd.f32 %v752_v15, %v638_v16 }
 0x14c   : > { %v648_v18 = vmax.f32 %v647_v17, 0.0 }
 0x14e   : > { %649 = vst [vmem:[%s407_s11] sm:$0xff] %v648_v18 }
 0x14f PF: > { %s15_s22 = sadd.s32 1, %s873_s22   ;;  %s1084_s18 = smov %s861_s19 }
 0x150   : > { %p12_p10 = scmp.ge.s32.totalorder %s15_s22, 4   ;;  %s1085_s19 = smov %s940_s26 }
 0x151   : > { %s1086_s20 = smov %s869_s21  ;;  %s1087_s21 = smov %s1089_s23 }
 0x152   :  { %14 = sbr.rel (!%p12_p10) target bundleno = 3 (0x3), region = 128 }

// kernel: autoencoder_forward.8
= control target key start
LH: loop header
LB: loop body
LE: loop exit
PB: predicated region body
PF: predicated region fallthrough
CT: control target
= control target key end

     0   :  { %s425_s1 = inlined_call_operand.vmem [shape: bf16[256,128], index: 1, kind: input, shape index: {}]   ;;  %s426_s0 = inlined_call_operand.vmem [shape: f32[8,256], index: 0, kind: input, shape index: {}]   ;;  %s427_s2 = inlined_call_operand.vmem [shape: f32[1,128], index: 2, kind: input, shape index: {}]   ;;  %s428_s3 = inlined_call_operand.vmem [shape: f32[1,128], index: 3, kind: input, shape index: {}]   ;;  %s429_s4 = inlined_call_operand.vmem [shape: f32[1,128], index: 4, kind: input, shape index: {}]   ;;  %s430_s5 = inlined_call_operand.vmem [shape: f32[8,128], index: 5, kind: output, shape index: {}]  }
   0x1   :  { %v311_v0 = vld [vmem:[%s425_s1 + $0x78] sm:$0xff]   ;;  %v313_v2 = vld [vmem:[%s425_s1 + $0x70] sm:$0xff]   ;;  %v315_v4 = vld [vmem:[%s425_s1 + $0x68] sm:$0xff]  }
   0x2   :  { %v312_v1 = vld [vmem:[%s425_s1 + $0x38] sm:$0xff]   ;;  %289 = vmatprep.subr.bf16.mxu0 %v311_v0  ;;  %v314_v3 = vld [vmem:[%s425_s1 + $0x30] sm:$0xff]   ;;  %v316_v5 = vld [vmem:[%s425_s1 + $0x28] sm:$0xff]  }
   0x3   :  { %290 = vmatpush3.bf16.msra.mxu0 %v312_v1  ;;  %v317_v6 = vld [vmem:[%s425_s1 + $0x60] sm:$0xff]   ;;  %v319_v8 = vld [vmem:[%s425_s1 + $0x58] sm:$0xff]   ;;  %v321_v10 = vld [vmem:[%s425_s1 + $0x50] sm:$0xff]  }
   0x4   :  { %291 = vmatprep.subr.bf16.mxu0 %v313_v2  ;;  %v318_v7 = vld [vmem:[%s425_s1 + $0x20] sm:$0xff]   ;;  %v320_v9 = vld [vmem:[%s425_s1 + $0x18] sm:$0xff]   ;;  %v32_v11 = vld [vmem:[%s426_s0 + $0x8] sm:$0xff] }
   0x5   :  { %v34_v12 = vpack.c.bf16 %v32_v11, %v32_v11  ;;  %v322_v13 = vld [vmem:[%s425_s1 + $0x10] sm:$0xff]   ;;  %v323_v14 = vld [vmem:[%s425_s1 + $0x48] sm:$0xff]   ;;  %v325_v16 = vld [vmem:[%s425_s1 + $0x40] sm:$0xff]  }
   0x6   :  { %v324_v15 = vld [vmem:[%s425_s1 + $0x8] sm:$0xff]   ;;  %v326_v17 = vld [vmem:[%s425_s1] sm:$0xff]  }
   0x7   :  { %292 = vmatpush3.bf16.msra.mxu0 %v314_v3  ;;  %196 = vmatprep.mubr.bf16.mxu0 %v34_v12  ;;  %v31_v18 = vld [vmem:[%s426_s0] sm:$0xff] }
   0x8   :  { %293 = vmatprep.subr.bf16.mxu0 %v315_v4  ;;  %v33_v19 = vpack.c.bf16 %v31_v18, %v31_v18  ;;  %v286_v22 = vld [vmem:[%s427_s2] ss:$0 sm:$0xff] }
   0x9   :  { %v287_v45 = vld [vmem:[%s428_s3] ss:$0 sm:$0xff] }
   0xa   :  { %v288_v47 = vld [vmem:[%s429_s4] ss:$0 sm:$0xff] }
   0xb   :  { %294 = vmatpush3.bf16.msra.mxu0 %v316_v5 }
   0xc   :  { %295 = vmatprep.subr.bf16.mxu0 %v317_v6 }
   0xf   :  { %296 = vmatpush3.bf16.msra.mxu0 %v318_v7 }
  0x10   :  { %297 = vmatprep.subr.bf16.mxu0 %v319_v8 }
  0x13   :  { %298 = vmatpush3.bf16.msra.mxu0 %v320_v9 }
  0x14   :  { %299 = vmatprep.subr.bf16.mxu0 %v321_v10 }
  0x17   :  { %300 = vmatpush3.bf16.msra.mxu0 %v322_v13 }
  0x18   :  { %301 = vmatprep.subr.bf16.mxu0 %v323_v14 }
  0x1b   :  { %302 = vmatpush3.bf16.msra.mxu0 %v324_v15 }
  0x1c   :  { %303 = vmatprep.subr.bf16.mxu0 %v325_v16 }
  0x1f   :  { %304 = vmatpush3.bf16.msra.mxu0 %v326_v17 }
  0x22   :  { %197 = vmatmul.mubr.bf16.vlgmr.msra.gmra.mxu0 %v33_v19 }
  0xe2   :  { %v305_v20 = vpop.f32.mrf.mxu0 }
  0xe4   :  { %v306_v21 = vpop.f32.mrf.mxu0 }
  0xe5   :  { %v307_v23 = vadd.f32 %v306_v21, %v305_v20 }
  0xe6   :  { %v308_v24 = vpop.f32.mrf.mxu0 }
  0xe7   :  { %v221_v25 = vadd.f32 %v307_v23, %v286_v22 }
  0xe8   :  { %v309_v26 = vpop.f32.mrf.mxu0 }
  0xe9   :  { %v222_v27 = vrot.slane %v221_v25, 4 }
  0xeb   :  { %v223_v28 = vadd.f32 %v222_v27, %v221_v25 }
  0xed   :  { %v224_v29 = vrot.slane %v223_v28, 2 }
  0xef   :  { %v225_v30 = vadd.f32 %v224_v29, %v223_v28 }
  0xf1   :  { %v226_v31 = vrot.slane %v225_v30, 1 }
  0xf3   :  { %v227_v32 = vadd.f32 %v226_v31, %v225_v30 }
  0xf5   :  { %v229_v33 = vmul.f32 0.125, %v227_v32 }
  0xf7   :  { %v230_v34 = vsub.f32 %v221_v25, %v229_v33 }
  0xf9   :  { %v231_v35 = vmul.f32 %v230_v34, %v230_v34 }
  0xfb   :  { %v232_v36 = vrot.slane %v231_v35, 4 }
  0xfd   :  { %v233_v37 = vadd.f32 %v232_v36, %v231_v35 }
  0xff   :  { %v234_v38 = vrot.slane %v233_v37, 2 }
 0x101   :  { %v235_v39 = vadd.f32 %v234_v38, %v233_v37 }
 0x103   :  { %v236_v40 = vrot.slane %v235_v39, 1 }
 0x105   :  { %v237_v41 = vadd.f32 %v236_v40, %v235_v39 }
 0x107   :  { %v238_v42 = vmul.f32 0.125, %v237_v41 }
 0x109   :  { %v239_v43 = vadd.f32 1e-05, %v238_v42 }
 0x10b   :  { %327 = vrsqrt.f32 %v239_v43 }
 0x118   :  { %v328_v44 = vpop.eup %327 }
 0x119   :  { %v241_v46 = vmul.f32 %v328_v44, %v230_v34 }
 0x11b   :  { %v250_v48 = vmul.f32 %v287_v45, %v241_v46 }
 0x11d   :  { %v259_v49 = vadd.f32 %v288_v47, %v250_v48 }
 0x11f   :  { %260 = vst [vmem:[%s430_s5] sm:$0xff] %v259_v49 }

// kernel: autoencoder_forward.9
= control target key start
LH: loop header
LB: loop body
LE: loop exit
PB: predicated region body
PF: predicated region fallthrough
CT: control target
= control target key end

     0   :  { %s768_s18 = smov 0   ;;  %s770_s19 = smov 0   ;;  %s870_s0 = inlined_call_operand.vmem [shape: f32[8,128], index: 0, kind: input, shape index: {}]   ;;  %s871_s1 = inlined_call_operand.vmem [shape: bf16[128,256], index: 1, kind: input, shape index: {}]   ;;  %s872_s2 = inlined_call_operand.vmem [shape: f32[1,256], index: 2, kind: input, shape index: {}]   ;;  %s873_s3 = inlined_call_operand.vmem [shape: f32[1,256], index: 3, kind: input, shape index: {}]   ;;  %s874_s4 = inlined_call_operand.vmem [shape: f32[1,256], index: 4, kind: input, shape index: {}]   ;;  %s875_s5 = inlined_call_operand.vmem [shape: f32[8,256], index: 5, kind: output, shape index: {}]  }
   0x1   :  { %s772_s20 = smov 0   ;;  %s774_s21 = smov 0  }
   0x2   :  { %s776_s22 = smov 0  }
   0x3 LB: > { %s27_s23 = sadd.s32 1, %s730_s21  ;;  %p64_p1 = scmp.ne.s32.totalorder %s722_s19, %s718_s18  ;;  %s734_s22 = sphi %s776_s22, %s15_s22   ;;  %s730_s21 = sphi %s774_s21, %s879_s21   ;;  %s726_s20 = sphi %s772_s20, %s878_s20   ;;  %s722_s19 = sphi %s770_s19, %s877_s19   ;;  %s718_s18 = sphi %s768_s18, %s876_s18  }
   0x4   : > { %p29_p0 = scmp.ge.s32.totalorder %s27_s23, 2  ;;  %p65_p2 = scmp.eq.s32.totalorder %s734_s22, 0 }
   0x5   : > { %s57_s25 = sadd.s32 1, %s722_s19  ;;  %p595_p5 = scmp.ge.s32.totalorder %s734_s22, 2 }
   0x6   : > { %s881_s23 = smov (%p29_p0, %s27_s23), 0  ;;  %p66_p3 = por %p65_p2, %p64_p1 }
   0x7   : > { %s53_s24 = ssub.s32 %s730_s21, %s881_s23  ;;  %191 = sbr.rel (%p595_p5) target bundleno = 26 (0x1a), region = 32 }
   0x8   : > { %p55_p4 = scmp.eq.s32.totalorder %s53_s24, 0 }
   0xa   : > { %s803_s26 = scalar_select %p55_p4, %s722_s19, %s57_s25  }
   0xc   : > { %194 = sbr.rel (!%p66_p3) target bundleno = 26 (0x1a), region = 36  ;;  %s196_s27 = sand.u32 (%p66_p3), 1, %s722_s19  }
   0xd   : > { %s597_s28 = sshll.u32 (%p66_p3), %s730_s21, 2  ;;  %s596_s29 = sshll.u32 (%p66_p3), %s196_s27, 6 }
   0xe   : > { %s811_s7 = scalar_lea.vmem (%p66_p3), %s871_s1, %s597_s28  ;;  %s198_s8 = scalar_lea.vmem (%p66_p3), [#allocation3], %s596_s29 }
   0xf   : > { %v220_v0 = vld [vmem:[%s811_s7] sm:$0xf] (%p66_p3)  ;;  %v222_v1 = vld [vmem:[%s811_s7 + $0x8] sm:$0xf] (%p66_p3)  ;;  %v224_v2 = vld [vmem:[%s811_s7 + $0x10] sm:$0xf] (%p66_p3) }
  0x10   : > { %221 = vst [vmem:[%s198_s8] sm:$0xf] (%p66_p3), %v220_v0  ;;  %223 = vst [vmem:[%s198_s8 + $0x4] sm:$0xf] (%p66_p3), %v222_v1  ;;  %v226_v3 = vld [vmem:[%s811_s7 + $0x18] sm:$0xf] (%p66_p3) }
  0x11   : > { %v228_v4 = vld [vmem:[%s811_s7 + $0x20] sm:$0xf]  ;;  %225 = vst [vmem:[%s198_s8 + $0x8] sm:$0xf] %v224_v2  ;;  %227 = vst [vmem:[%s198_s8 + $0xc] sm:$0xf] %v226_v3 }
  0x12   : > { %229 = vst [vmem:[%s198_s8 + $0x10] sm:$0xf] %v228_v4  ;;  %v230_v5 = vld [vmem:[%s811_s7 + $0x28] sm:$0xf]  ;;  %v232_v6 = vld [vmem:[%s811_s7 + $0x30] sm:$0xf] }
  0x13   : > { %v234_v7 = vld [vmem:[%s811_s7 + $0x38] sm:$0xf]  ;;  %231 = vst [vmem:[%s198_s8 + $0x14] sm:$0xf] %v230_v5  ;;  %233 = vst [vmem:[%s198_s8 + $0x18] sm:$0xf] %v232_v6 }
  0x14   : > { %235 = vst [vmem:[%s198_s8 + $0x1c] sm:$0xf] %v234_v7  ;;  %v236_v8 = vld [vmem:[%s811_s7 + $0x40] sm:$0xf]  ;;  %v238_v9 = vld [vmem:[%s811_s7 + $0x48] sm:$0xf] }
  0x15   : > { %v240_v10 = vld [vmem:[%s811_s7 + $0x50] sm:$0xf]  ;;  %237 = vst [vmem:[%s198_s8 + $0x20] sm:$0xf] %v236_v8  ;;  %239 = vst [vmem:[%s198_s8 + $0x24] sm:$0xf] %v238_v9 }
  0x16   : > { %241 = vst [vmem:[%s198_s8 + $0x28] sm:$0xf] %v240_v10  ;;  %v242_v11 = vld [vmem:[%s811_s7 + $0x58] sm:$0xf]  ;;  %v244_v12 = vld [vmem:[%s811_s7 + $0x60] sm:$0xf] }
  0x17   : > { %v246_v13 = vld [vmem:[%s811_s7 + $0x68] sm:$0xf]  ;;  %243 = vst [vmem:[%s198_s8 + $0x2c] sm:$0xf] %v242_v11  ;;  %245 = vst [vmem:[%s198_s8 + $0x30] sm:$0xf] %v244_v12 }
  0x18   : > { %247 = vst [vmem:[%s198_s8 + $0x34] sm:$0xf] %v246_v13  ;;  %v248_v14 = vld [vmem:[%s811_s7 + $0x70] sm:$0xf]  ;;  %v250_v15 = vld [vmem:[%s811_s7 + $0x78] sm:$0xf] }
  0x19   : > { %249 = vst [vmem:[%s198_s8 + $0x38] sm:$0xf] %v248_v14  ;;  %251 = vst [vmem:[%s198_s8 + $0x3c] sm:$0xf] %v250_v15 }
  0x1a PF: > { %p598_p6 = scmp.ge.s32.totalorder %s734_s22, 1  ;;  %p306_p7 = scmp.lt.s32.totalorder %s734_s22, 3 }
  0x1c   : > { %p307_p8 = pnand %p598_p6, %p306_p7 }
  0x1d   : > { %s313_s9 = sand.u32 (!%p307_p8), 1, %s718_s18   ;;  %s609_s14 = sshll.u32 (!%p307_p8), %s726_s20, 7 }
  0x1e   : > { %310 = sbr.rel (%p307_p8) target bundleno = 320 (0x140), region = 77  ;;  %s599_s10 = sshll.u32 (!%p307_p8), %s313_s9, 6 }
  0x1f   : > { %s315_s11 = scalar_lea.vmem (!%p307_p8), [#allocation3], %s599_s10  ;;  %s836_s15 = sshra.s32 (!%p307_p8), %s609_s14, 7 }
  0x20   : > { %s470_s18 = scalar_lea.vmem (!%p307_p8), %s872_s2, %s836_s15  ;;  %p340_p9 = scmp.lt.s32.totalorder (!%p307_p8), %s726_s20, 1 }
  0x21   : > { %s499_s27 = scalar_lea.vmem (!%p307_p8), %s873_s3, %s836_s15  ;;  %s508_s30 = scalar_lea.vmem (!%p307_p8), %s874_s4, %s836_s15 }
  0x23   : > { %v736_v16 = vmov 0.0   ;;  %vm737_vm0 = vmmov 0   ;;  %v686_v17 = vld [vmem:[%s315_s11 + $0x38] sm:$0xff]   ;;  %v687_v18 = vld [vmem:[%s315_s11 + $0x30] sm:$0xff]   ;;  %v688_v19 = vld [vmem:[%s315_s11 + $0x28] sm:$0xff]   ;;  %s883_s20 = smov (!%p340_p9, %s726_s20), 1 }
  0x24   : > { %624 = vmatprep.subr.bf16.mxu0 %v736_v16  ;;  %640 = vmatprep.mubr.msk.bf16.mxu0 %vm737_vm0, %v736_v16  ;;  %v689_v20 = vld [vmem:[%s315_s11 + $0x20] sm:$0xff]   ;;  %v690_v21 = vld [vmem:[%s315_s11 + $0x18] sm:$0xff]   ;;  %v691_v22 = vld [vmem:[%s315_s11 + $0x10] sm:$0xff]   ;;  %s600_s6 = sshll.u32 %s883_s20, 3 }
  0x25   : > { %625 = vmatpush3.bf16.msra.mxu0 %v686_v17  ;;  %v692_v23 = vld [vmem:[%s315_s11 + $0x8] sm:$0xff]   ;;  %v693_v24 = vld [vmem:[%s315_s11] sm:$0xff]   ;;  %s343_s9 = scalar_lea.vmem %s875_s5, %s600_s6 }
  0x26   : > { %626 = vmatprep.subr.bf16.mxu0 %v736_v16  ;;  %v354_v25 = vld [vmem:[%s870_s0] sm:$0xff] }
  0x27   : > { %v355_v26 = vpack.c.bf16 %v354_v25, %v354_v25  ;;  %v610_v27 = vld [vmem:[%s470_s18] ss:$0 sm:$0xff] }
  0x28   : > { %v611_v51 = vld [vmem:[%s499_s27] ss:$0 sm:$0xff] }
  0x29   : > { %627 = vmatpush3.bf16.msra.mxu0 %v687_v18  ;;  %v612_v53 = vld [vmem:[%s508_s30] ss:$0 sm:$0xff] }
  0x2a   : > { %628 = vmatprep.subr.bf16.mxu0 %v736_v16 }
  0x2d   : > { %629 = vmatpush3.bf16.msra.mxu0 %v688_v19 }
  0x2e   : > { %630 = vmatprep.subr.bf16.mxu0 %v736_v16 }
  0x31   : > { %631 = vmatpush3.bf16.msra.mxu0 %v689_v20 }
  0x32   : > { %632 = vmatprep.subr.bf16.mxu0 %v736_v16 }
  0x35   : > { %633 = vmatpush3.bf16.msra.mxu0 %v690_v21 }
  0x36   : > { %634 = vmatprep.subr.bf16.mxu0 %v736_v16 }
  0x39   : > { %635 = vmatpush3.bf16.msra.mxu0 %v691_v22 }
  0x3a   : > { %636 = vmatprep.subr.bf16.mxu0 %v736_v16 }
  0x3d   : > { %637 = vmatpush3.bf16.msra.mxu0 %v692_v23 }
  0x3e   : > { %638 = vmatprep.subr.bf16.mxu0 %v736_v16 }
  0x41   : > { %639 = vmatpush3.bf16.msra.mxu0 %v693_v24 }
  0x44   : > { %641 = vmatmul.mubr.bf16.vlgmr.msra.gmra.mxu0 %v355_v26 }
 0x104   : > { %v455_v28 = vpop.f32.mrf.mxu0 }
 0x105   : > { %v478_v29 = vadd.f32 %v610_v27, %v455_v28 }
 0x106   : > { %v642_v30 = vpop.f32.mrf.mxu0 }
 0x107   : > { %v479_v31 = vrot.slane %v478_v29, 4 }
 0x108   : > { %v458_v32 = vpop.f32.mrf.mxu0 }
 0x109   : > { %v480_v33 = vadd.f32 %v479_v31, %v478_v29 }
 0x10a   : > { %v643_v34 = vpop.f32.mrf.mxu0 }
 0x10b   : > { %v481_v35 = vrot.slane %v480_v33, 2 }
 0x10d   : > { %v482_v36 = vadd.f32 %v481_v35, %v480_v33 }
 0x10f   : > { %v483_v37 = vrot.slane %v482_v36, 1 }
 0x111   : > { %v484_v38 = vadd.f32 %v483_v37, %v482_v36 }
 0x113   : > { %v486_v39 = vmul.f32 0.125, %v484_v38 }
 0x115   : > { %v487_v40 = vsub.f32 %v478_v29, %v486_v39 }
 0x117   : > { %v488_v41 = vmul.f32 %v487_v40, %v487_v40 }
 0x119   : > { %v489_v42 = vrot.slane %v488_v41, 4 }
 0x11b   : > { %v490_v43 = vadd.f32 %v489_v42, %v488_v41 }
 0x11d   : > { %v491_v44 = vrot.slane %v490_v43, 2 }
 0x11f   : > { %v492_v45 = vadd.f32 %v491_v44, %v490_v43 }
 0x121   : > { %v493_v46 = vrot.slane %v492_v45, 1 }
 0x123   : > { %v494_v47 = vadd.f32 %v493_v46, %v492_v45 }
 0x125   : > { %v495_v48 = vmul.f32 0.125, %v494_v47 }
 0x127   : > { %v496_v49 = vadd.f32 1e-05, %v495_v48 }
 0x129   : > { %694 = vrsqrt.f32 %v496_v49 }
 0x136   : > { %v695_v50 = vpop.eup %694 }
 0x137   : > { %v498_v52 = vmul.f32 %v695_v50, %v487_v40 }
 0x139   : > { %v507_v54 = vmul.f32 %v611_v51, %v498_v52 }
 0x13b   : > { %v516_v55 = vadd.f32 %v612_v53, %v507_v54 }
 0x13d   : > { %v517_v56 = vmax.f32 %v516_v55, 0.0 }
 0x13f   : > { %518 = vst [vmem:[%s343_s9] sm:$0xff] %v517_v56 }
 0x140 PF: > { %s15_s22 = sadd.s32 1, %s734_s22   ;;  %s876_s18 = smov %s722_s19 }
 0x141   : > { %p12_p10 = scmp.ge.s32.totalorder %s15_s22, 4   ;;  %s877_s19 = smov %s803_s26 }
 0x142   : > { %s878_s20 = smov %s730_s21  ;;  %s879_s21 = smov %s881_s23 }
 0x143   :  { %14 = sbr.rel (!%p12_p10) target bundleno = 3 (0x3), region = 128 }

// kernel: autoencoder_forward.11
= control target key start
LH: loop header
LB: loop body
LE: loop exit
PB: predicated region body
PF: predicated region fallthrough
CT: control target
= control target key end

     0   :  { %10 = vsyncpa [#allocation5], 0  ;;  %s1290_s0 = inlined_call_operand.vmem [shape: f32[8,256], index: 0, kind: input, shape index: {}]   ;;  %s1291_s1 = inlined_call_operand.vmem [shape: bf16[256,512], index: 1, kind: input, shape index: {}]   ;;  %s1292_s2 = inlined_call_operand.vmem [shape: f32[1,512], index: 2, kind: input, shape index: {}]   ;;  %s1293_s3 = inlined_call_operand.vmem [shape: f32[1,512], index: 3, kind: input, shape index: {}]   ;;  %s1294_s4 = inlined_call_operand.vmem [shape: f32[1,512], index: 4, kind: input, shape index: {}]   ;;  %s1295_s5 = inlined_call_operand.hbm [shape: f32[8,512], index: 5, kind: output, shape index: {}]  }
   0x1   :  { %12 = vsyncpa [#allocation5 + $0x1], 0  ;;  %s1060_s18 = smov 0   ;;  %s1062_s19 = smov 0  }
   0x2   :  { %s1064_s20 = smov 0   ;;  %s1066_s21 = smov 0  }
   0x3   :  { %s1068_s22 = smov 0   ;;  %s1070_s23 = smov 0  }
   0x4 LB: > { %s788_s3 = sadd.s32 4294967295, %s1027_s23   ;;  %s789_s4 = sadd.s32 4294967294, %s1027_s23   ;;  %s1027_s23 = sphi %s1070_s23, %s18_s23   ;;  %s1023_s22 = sphi %s1068_s22, %s1302_s22   ;;  %s1019_s21 = sphi %s1066_s21, %s1301_s21   ;;  %s1015_s20 = sphi %s1064_s20, %s1300_s20   ;;  %s1011_s19 = sphi %s1062_s19, %s1299_s19   ;;  %s1007_s18 = sphi %s1060_s18, %s1298_s18  }
   0x5   : > { %s30_s24 = sadd.s32 1, %s1023_s22  ;;  %s60_s25 = sadd.s32 1, %s1015_s20 }
   0x6   : > { %p32_p0 = scmp.ge.s32.totalorder %s30_s24, 2  ;;  %p67_p1 = scmp.ne.s32.totalorder %s1015_s20, %s1011_s19 }
   0x7   : > { %p68_p2 = scmp.eq.s32.totalorder %s1027_s23, 0  ;;  %p160_p3 = scmp.eq.s32.totalorder %s788_s3, 1 }
   0x8   : > { %s1304_s24 = smov (%p32_p0, %s30_s24), 0  ;;  %p165_p6 = scmp.ne.s32.totalorder %s1011_s19, %s1007_s18 }
   0x9   : > { %p69_p4 = por %p68_p2, %p67_p1  ;;  %p1099_p5 = por %p160_p3, %p67_p1 }
   0xa   : > { %s56_s27 = ssub.s32 %s1023_s22, %s1304_s24  ;;  %p166_p8 = scmp.eq.s32.totalorder %s789_s4, 1 }
   0xb   : > { %p58_p7 = scmp.eq.s32.totalorder %s56_s27, 0  ;;  %p791_p10 = scmp.ge.s32.totalorder %s1027_s23, 2 }
   0xc   : > { %p1110_p9 = por %p166_p8, %p165_p6 }
   0xd   : > { %s1108_s28 = scalar_select %p58_p7, %s1015_s20, %s60_s25  }
   0xe   : > { %194 = sbr.rel (%p791_p10) target bundleno = 39 (0x27), region = 32 }
  0x13   : > { %197 = sbr.rel (!%p69_p4) target bundleno = 39 (0x27), region = 36  ;;  %s199_s30 = sand.u32 (%p69_p4), 1, %s1015_s20  }
  0x14   : > { %s838_s6 = sshll.u32 (%p69_p4), %s1023_s22, 3  ;;  %s792_s7 = sshll.u32 (%p69_p4), %s199_s30, 8 }
  0x15   : > { %s1122_s10 = scalar_lea.vmem (%p69_p4), %s1291_s1, %s838_s6  ;;  %s1127_s11 = scalar_lea.vmem (%p69_p4), [#allocation3], %s792_s7 }
  0x16   : > { %v298_v0 = vld [vmem:[%s1122_s10] sm:$0xff] (%p69_p4)  ;;  %v300_v1 = vld [vmem:[%s1122_s10 + $0x10] sm:$0xff] (%p69_p4) }
  0x17   : > { %v302_v2 = vld [vmem:[%s1122_s10 + $0x20] sm:$0xff] (%p69_p4)  ;;  %299 = vst [vmem:[%s1127_s11] sm:$0xff] (%p69_p4), %v298_v0  ;;  %301 = vst [vmem:[%s1127_s11 + $0x8] sm:$0xff] (%p69_p4), %v300_v1  ;;  %v304_v3 = vld [vmem:[%s1122_s10 + $0x30] sm:$0xff] (%p69_p4) }
  0x18   : > { %303 = vst [vmem:[%s1127_s11 + $0x10] sm:$0xff] %v302_v2  ;;  %v306_v4 = vld [vmem:[%s1122_s10 + $0x40] sm:$0xff]  ;;  %v308_v5 = vld [vmem:[%s1122_s10 + $0x50] sm:$0xff]  ;;  %305 = vst [vmem:[%s1127_s11 + $0x18] sm:$0xff] %v304_v3 }
  0x19   : > { %307 = vst [vmem:[%s1127_s11 + $0x20] sm:$0xff] %v306_v4  ;;  %309 = vst [vmem:[%s1127_s11 + $0x28] sm:$0xff] %v308_v5  ;;  %v310_v6 = vld [vmem:[%s1122_s10 + $0x60] sm:$0xff]  ;;  %v312_v7 = vld [vmem:[%s1122_s10 + $0x70] sm:$0xff] }
  0x1a   : > { %v314_v8 = vld [vmem:[%s1122_s10 + $0x80] sm:$0xff]  ;;  %311 = vst [vmem:[%s1127_s11 + $0x30] sm:$0xff] %v310_v6  ;;  %313 = vst [vmem:[%s1127_s11 + $0x38] sm:$0xff] %v312_v7  ;;  %v316_v9 = vld [vmem:[%s1122_s10 + $0x90] sm:$0xff] }
  0x1b   : > { %315 = vst [vmem:[%s1127_s11 + $0x40] sm:$0xff] %v314_v8  ;;  %v318_v10 = vld [vmem:[%s1122_s10 + $0xa0] sm:$0xff]  ;;  %v320_v11 = vld [vmem:[%s1122_s10 + $0xb0] sm:$0xff]  ;;  %317 = vst [vmem:[%s1127_s11 + $0x48] sm:$0xff] %v316_v9 }
  0x1c   : > { %319 = vst [vmem:[%s1127_s11 + $0x50] sm:$0xff] %v318_v10  ;;  %321 = vst [vmem:[%s1127_s11 + $0x58] sm:$0xff] %v320_v11  ;;  %v322_v12 = vld [vmem:[%s1122_s10 + $0xc0] sm:$0xff]  ;;  %v324_v13 = vld [vmem:[%s1122_s10 + $0xd0] sm:$0xff] }
  0x1d   : > { %v326_v14 = vld [vmem:[%s1122_s10 + $0xe0] sm:$0xff]  ;;  %323 = vst [vmem:[%s1127_s11 + $0x60] sm:$0xff] %v322_v12  ;;  %325 = vst [vmem:[%s1127_s11 + $0x68] sm:$0xff] %v324_v13  ;;  %v328_v15 = vld [vmem:[%s1122_s10 + $0xf0] sm:$0xff] }
  0x1e   : > { %327 = vst [vmem:[%s1127_s11 + $0x70] sm:$0xff] %v326_v14  ;;  %v330_v16 = vld [vmem:[%s1122_s10 + $0x100] sm:$0xff]  ;;  %v332_v17 = vld [vmem:[%s1122_s10 + $0x110] sm:$0xff]  ;;  %329 = vst [vmem:[%s1127_s11 + $0x78] sm:$0xff] %v328_v15 }
  0x1f   : > { %331 = vst [vmem:[%s1127_s11 + $0x80] sm:$0xff] %v330_v16  ;;  %333 = vst [vmem:[%s1127_s11 + $0x88] sm:$0xff] %v332_v17  ;;  %v334_v18 = vld [vmem:[%s1122_s10 + $0x120] sm:$0xff]  ;;  %v336_v19 = vld [vmem:[%s1122_s10 + $0x130] sm:$0xff] }
  0x20   : > { %v338_v20 = vld [vmem:[%s1122_s10 + $0x140] sm:$0xff]  ;;  %335 = vst [vmem:[%s1127_s11 + $0x90] sm:$0xff] %v334_v18  ;;  %337 = vst [vmem:[%s1127_s11 + $0x98] sm:$0xff] %v336_v19  ;;  %v340_v21 = vld [vmem:[%s1122_s10 + $0x150] sm:$0xff] }
  0x21   : > { %339 = vst [vmem:[%s1127_s11 + $0xa0] sm:$0xff] %v338_v20  ;;  %v342_v22 = vld [vmem:[%s1122_s10 + $0x160] sm:$0xff]  ;;  %v344_v23 = vld [vmem:[%s1122_s10 + $0x170] sm:$0xff]  ;;  %341 = vst [vmem:[%s1127_s11 + $0xa8] sm:$0xff] %v340_v21 }
  0x22   : > { %343 = vst [vmem:[%s1127_s11 + $0xb0] sm:$0xff] %v342_v22  ;;  %345 = vst [vmem:[%s1127_s11 + $0xb8] sm:$0xff] %v344_v23  ;;  %v346_v24 = vld [vmem:[%s1122_s10 + $0x180] sm:$0xff]  ;;  %v348_v25 = vld [vmem:[%s1122_s10 + $0x190] sm:$0xff] }
  0x23   : > { %v350_v26 = vld [vmem:[%s1122_s10 + $0x1a0] sm:$0xff]  ;;  %347 = vst [vmem:[%s1127_s11 + $0xc0] sm:$0xff] %v346_v24  ;;  %349 = vst [vmem:[%s1127_s11 + $0xc8] sm:$0xff] %v348_v25  ;;  %v352_v27 = vld [vmem:[%s1122_s10 + $0x1b0] sm:$0xff] }
  0x24   : > { %351 = vst [vmem:[%s1127_s11 + $0xd0] sm:$0xff] %v350_v26  ;;  %v354_v28 = vld [vmem:[%s1122_s10 + $0x1c0] sm:$0xff]  ;;  %v356_v29 = vld [vmem:[%s1122_s10 + $0x1d0] sm:$0xff]  ;;  %353 = vst [vmem:[%s1127_s11 + $0xd8] sm:$0xff] %v352_v27 }
  0x25   : > { %355 = vst [vmem:[%s1127_s11 + $0xe0] sm:$0xff] %v354_v28  ;;  %357 = vst [vmem:[%s1127_s11 + $0xe8] sm:$0xff] %v356_v29  ;;  %v358_v30 = vld [vmem:[%s1122_s10 + $0x1e0] sm:$0xff]  ;;  %v360_v31 = vld [vmem:[%s1122_s10 + $0x1f0] sm:$0xff] }
  0x26   : > { %359 = vst [vmem:[%s1127_s11 + $0xf0] sm:$0xff] %v358_v30  ;;  %361 = vst [vmem:[%s1127_s11 + $0xf8] sm:$0xff] %v360_v31 }
  0x27 PF: > { %p795_p11 = scmp.ge.s32.totalorder %s1027_s23, 1  ;;  %p366_p12 = scmp.lt.s32.totalorder %s1027_s23, 3 }
  0x29   : > { %p367_p13 = pnand %p795_p11, %p366_p12 }
  0x2a   : > { %s1193_s12 = sand.u32 (!%p367_p13), 1, %s1011_s19   ;;  %s830_s4 = sshll.u32 (!%p367_p13), %s1019_s21, 8 }
  0x2b   : > { %370 = sbr.rel (%p367_p13) target bundleno = 355 (0x163), region = 74  ;;  %s796_s15 = sshll.u32 (!%p367_p13), %s1193_s12, 8 }
  0x2c   : > { %s1199_s16 = scalar_lea.vmem (!%p367_p13), [#allocation3], %s796_s15  ;;  %s663_s25 = sshra.s32 (!%p367_p13), %s830_s4, 7 }
  0x2d   : > { %s665_s6 = scalar_lea.vmem (!%p367_p13), %s1292_s2, %s663_s25  ;;  %s797_s7 = sshll.u32 (!%p367_p13), %s1193_s12, 4 }
  0x2e   : > { %s399_s8 = scalar_lea.vmem (!%p367_p13), [#allocation4], %s797_s7  ;;  %s1248_s13 = scalar_lea.hbm (!%p367_p13), %s1295_s5, %s830_s4 }
  0x2f   : > { %s709_s9 = sshll.u32 (!%p367_p13), %s399_s8, 4  ;;  %s695_s14 = scalar_lea.sflag (!%p367_p13), [#allocation5], %s1193_s12  ;;  %s710_s9 = int_to_ptr.vmem [resolvable:$true] %s709_s9 }
  0x30   : > { %v415_v32 = vld [vmem:[%s1290_s0 + $0x8] sm:$0xff]  ;;  %v895_v34 = vld [vmem:[%s1199_s16 + $0x74] ss:$8 sps:$4 sm:$0xff]   ;;  %v897_v35 = vld [vmem:[%s1199_s16 + $0x70] ss:$8 sps:$4 sm:$0xff]   ;;  %v668_v4 = vlaneseq  ;;  %s951_s15 = scalar_lea.vmem %s710_s9, 256 }
  0x31   : > { %v417_v33 = vpack.c.bf16 %v415_v32, %v415_v32  ;;  %612 = vmatprep.subr.bf16.mxu0 %v895_v34  ;;  %v898_v36 = vld [vmem:[%s1199_s16 + $0x64] ss:$8 sps:$4 sm:$0xff]   ;;  %v900_v37 = vld [vmem:[%s1199_s16 + $0x60] ss:$8 sps:$4 sm:$0xff]   ;;  %v901_v38 = vld [vmem:[%s1199_s16 + $0x54] ss:$8 sps:$4 sm:$0xff]   ;;  %p952_p0 = scmp.ne.s32.totalorder %s710_s9, %s951_s15 }
  0x32   : > { %613 = vmatpush1.bf16.msra.mxu0 %v897_v35  ;;  %v903_v39 = vld [vmem:[%s1199_s16 + $0x50] ss:$8 sps:$4 sm:$0xff]   ;;  %v904_v40 = vld [vmem:[%s1199_s16 + $0x44] ss:$8 sps:$4 sm:$0xff]   ;;  %v906_v41 = vld [vmem:[%s1199_s16 + $0x40] ss:$8 sps:$4 sm:$0xff]  }
  0x33   : > { %644 = vmatprep.mubr.bf16.mxu0 %v417_v33  ;;  %614 = vmatprep.subr.bf16.mxu0 %v898_v36  ;;  %v907_v42 = vld [vmem:[%s1199_s16 + $0x34] ss:$8 sps:$4 sm:$0xff]   ;;  %v909_v43 = vld [vmem:[%s1199_s16 + $0x30] ss:$8 sps:$4 sm:$0xff]   ;;  %v910_v44 = vld [vmem:[%s1199_s16 + $0x24] ss:$8 sps:$4 sm:$0xff]   ;;  %p953_p1 = pnand %p952_p0, %p1099_p5 }
  0x34   : > { %v912_v45 = vld [vmem:[%s1199_s16 + $0x20] ss:$8 sps:$4 sm:$0xff]   ;;  %v913_v46 = vld [vmem:[%s1199_s16 + $0x14] ss:$8 sps:$4 sm:$0xff]   ;;  %v915_v47 = vld [vmem:[%s1199_s16 + $0x10] ss:$8 sps:$4 sm:$0xff]  }
  0x35   : > { %v916_v48 = vld [vmem:[%s1199_s16 + $0x4] ss:$8 sps:$4 sm:$0xff]   ;;  %v918_v49 = vld [vmem:[%s1199_s16] ss:$8 sps:$4 sm:$0xff]   ;;  %v919_v50 = vld [vmem:[%s1199_s16 + $0xf4] ss:$8 sps:$4 sm:$0xff]   ;;  %p954_p2 = pneg %p953_p1 }
  0x36   : > { %615 = vmatpush1.bf16.msra.mxu0 %v900_v37  ;;  %v921_v51 = vld [vmem:[%s1199_s16 + $0xf0] ss:$8 sps:$4 sm:$0xff]   ;;  %v922_v52 = vld [vmem:[%s1199_s16 + $0xe4] ss:$8 sps:$4 sm:$0xff]   ;;  %v924_v53 = vld [vmem:[%s1199_s16 + $0xe0] ss:$8 sps:$4 sm:$0xff]  }
  0x37   : > { %616 = vmatprep.subr.bf16.mxu0 %v901_v38  ;;  %v925_v54 = vld [vmem:[%s1199_s16 + $0xd4] ss:$8 sps:$4 sm:$0xff]   ;;  %v927_v55 = vld [vmem:[%s1199_s16 + $0xd0] ss:$8 sps:$4 sm:$0xff]   ;;  %v928_v56 = vld [vmem:[%s1199_s16 + $0xc4] ss:$8 sps:$4 sm:$0xff]  }
  0x38   : > { %v930_v57 = vld [vmem:[%s1199_s16 + $0xc0] ss:$8 sps:$4 sm:$0xff]   ;;  %v931_v58 = vld [vmem:[%s1199_s16 + $0xb4] ss:$8 sps:$4 sm:$0xff]   ;;  %v933_v59 = vld [vmem:[%s1199_s16 + $0xb0] ss:$8 sps:$4 sm:$0xff]  }
  0x39   : > { %v934_v60 = vld [vmem:[%s1199_s16 + $0xa4] ss:$8 sps:$4 sm:$0xff]   ;;  %v936_v61 = vld [vmem:[%s1199_s16 + $0xa0] ss:$8 sps:$4 sm:$0xff]   ;;  %v937_v62 = vld [vmem:[%s1199_s16 + $0x94] ss:$8 sps:$4 sm:$0xff]  }
  0x3a   : > { %617 = vmatpush1.bf16.msra.mxu0 %v903_v39  ;;  %v939_v63 = vld [vmem:[%s1199_s16 + $0x90] ss:$8 sps:$4 sm:$0xff]   ;;  %v940_v0 = vld [vmem:[%s1199_s16 + $0x84] ss:$8 sps:$4 sm:$0xff]   ;;  %v942_v1 = vld [vmem:[%s1199_s16 + $0x80] ss:$8 sps:$4 sm:$0xff]  }
  0x3b   : > { %618 = vmatprep.subr.bf16.mxu0 %v904_v40  ;;  %v414_v2 = vld [vmem:[%s1290_s0] sm:$0xff]  ;;  %v669_v5 = vshrl.u32 %v668_v4, 7  ;;  %s1029_s16 = smov [#allocation4]  }
  0x3c   : > { %v416_v3 = vpack.c.bf16 %v414_v2, %v414_v2  ;;  %v666_v7 = vld [vmem:[%s665_s6] sm:$0x3]  ;;  %s955_s17 = sshll.u32 %s1029_s16, 4  ;;  %s956_s17 = int_to_ptr.vmem [resolvable:$false] %s955_s17 }
  0x3d   : > { %v670_v6 = vsub.s32 0, %v669_v5  ;;  %v674_v8 = vsub.s32 1, %v669_v5  ;;  %s957_s3 = scalar_lea.vmem %s956_s17, 512  ;;  %p958_p3 = scmp.lt.s32.totalorder %s710_s9, %s956_s17 }
  0x3e   : > { %619 = vmatpush1.bf16.msra.mxu0 %v906_v41  ;;  %p959_p4 = scmp.lt.s32.totalorder %s957_s3, %s951_s15 }
  0x3f   : > { %620 = vmatprep.subr.bf16.mxu0 %v907_v42  ;;  %v671_v9 = vrot.slane %v666_v7, %v670_v6  ;;  %v675_v10 = vrot.slane %v666_v7, %v674_v8 }
  0x40   : > { %p960_p6 = por %p959_p4, %p958_p3 }
  0x42   : > { %621 = vmatpush1.bf16.msra.mxu0 %v909_v43  ;;  %p961_p7 = pnand %p960_p6, %p954_p2 }
  0x43   : > { %622 = vmatprep.subr.bf16.mxu0 %v910_v44 }
  0x46   : > { %623 = vmatpush1.bf16.msra.mxu0 %v912_v45 }
  0x47   : > { %624 = vmatprep.subr.bf16.mxu0 %v913_v46 }
  0x4a   : > { %625 = vmatpush1.bf16.msra.mxu0 %v915_v47 }
  0x4b   : > { %626 = vmatprep.subr.bf16.mxu0 %v916_v48 }
  0x4e   : > { %627 = vmatpush1.bf16.msra.mxu0 %v918_v49 }
  0x4f   : > { %628 = vmatprep.subr.bf16.mxu0 %v919_v50 }
  0x52   : > { %629 = vmatpush2.bf16.msra.mxu0 %v921_v51 }
  0x53   : > { %630 = vmatprep.subr.bf16.mxu0 %v922_v52 }
  0x56   : > { %631 = vmatpush2.bf16.msra.mxu0 %v924_v53 }
  0x57   : > { %632 = vmatprep.subr.bf16.mxu0 %v925_v54 }
  0x5a   : > { %633 = vmatpush2.bf16.msra.mxu0 %v927_v55 }
  0x5b   : > { %634 = vmatprep.subr.bf16.mxu0 %v928_v56 }
  0x5e   : > { %635 = vmatpush2.bf16.msra.mxu0 %v930_v57 }
  0x5f   : > { %636 = vmatprep.subr.bf16.mxu0 %v931_v58 }
  0x62   : > { %637 = vmatpush2.bf16.msra.mxu0 %v933_v59 }
  0x63   : > { %638 = vmatprep.subr.bf16.mxu0 %v934_v60 }
  0x66   : > { %639 = vmatpush2.bf16.msra.mxu0 %v936_v61 }
  0x67   : > { %640 = vmatprep.subr.bf16.mxu0 %v937_v62 }
  0x6a   : > { %641 = vmatpush2.bf16.msra.mxu0 %v939_v63 }
  0x6b   : > { %642 = vmatprep.subr.bf16.mxu0 %v940_v0 }
  0x6e   : > { %643 = vmatpush2.bf16.msra.mxu0 %v942_v1 }
  0x71   : > { %645 = vmatmul.mubr.bf16.vlgmr.msra.gmra.mxu0 %v416_v3 }
 0x131   : > { %v646_v11 = vpop.f32.mrf.mxu0 }
 0x132   : > { %v678_v12 = vadd.f32 %v671_v9, %v646_v11 }
 0x133   : > { %v648_v13 = vpop.f32.mrf.mxu0 }
 0x134   : > { %v831_v14 = vmul.f32 -1.442695, %v678_v12  ;;  %v679_v15 = vadd.f32 %v675_v10, %v648_v13 }
 0x135   : > { %v650_v16 = vpop.f32.mrf.mxu0 }
 0x136   : > { %943 = vpow2.f32 %v831_v14  ;;  %v832_v17 = vmul.f32 -1.442695, %v679_v15 }
 0x137   : > { %v651_v18 = vpop.f32.mrf.mxu0 }
 0x138   : > { %945 = vpow2.f32 %v832_v17 }
 0x143   : > { %v944_v19 = vpop.eup %943 }
 0x144   : > { %v686_v20 = vadd.f32 1.0, %v944_v19 }
 0x145   : > { %v946_v21 = vpop.eup %945 }
 0x146   : > { %947 = vrcp.f32 %v686_v20  ;;  %v687_v22 = vadd.f32 1.0, %v946_v21 }
 0x148   : > { %949 = vrcp.f32 %v687_v22 }
 0x153   : > { %v948_v23 = vpop.eup %947 }
 0x154   : > { %692 = vst [vmem:[%s399_s8] sm:$0xff] %v948_v23 }
 0x155   : > { %v950_v24 = vpop.eup %949 }
 0x156   : > { %693 = vst [vmem:[%s399_s8 + $0x8] sm:$0xff] %v950_v24 }
 0x157   : > { %964 = shalt.err (!%p961_p7)
}
 0x158   : > { %s965_s21 = scalar_lea.hbm %s1248_s13, 256  ;;  %s969_s25 = scalar_lea.hbm %s1295_s5, 512 }
 0x159   : > { %p966_p8 = scmp.ne.s32.totalorder %s1248_s13, %s965_s21  ;;  %p970_p13 = scmp.lt.s32.totalorder %s1248_s13, %s1295_s5 }
 0x15a   : > { %p971_p0 = scmp.lt.s32.totalorder %s969_s25, %s965_s21 }
 0x15b   : > { %p967_p11 = pnand %p966_p8, %p1099_p5 }
 0x15c   : > { %p972_p1 = por %p971_p0, %p970_p13 }
 0x15d   : > { %p968_p12 = pneg %p967_p11 }
 0x15f   : > { %p973_p2 = pnand %p972_p1, %p968_p12 }
 0x161   : > { %976 = shalt.err (!%p973_p2)
}
 0x162   : > { %840 = dma.vmem_to_hbm [thread:$0]  (%p1099_p5), %s710_s9, 256, %s1248_s13, %s695_s14  }
 0x163 PF: > { %s721_s6 = sand.u32 1, %s1007_s18   ;;  %p843_p3 = pnand %p791_p10, %p1110_p9 }
 0x164   : > { %s722_s7 = scalar_lea.sflag [#allocation5], %s721_s6 }
 0x165   : > { %p844_p4 = pneg %p843_p3 }
 0x167   : > { %1002 = dma.done.wait (%p844_p4), %s722_s7, 256  }
 0x168   : > { %1004 = vsyncadd (%p844_p4), %s722_s7, 4294967040  ;;  %s18_s23 = sadd.s32 1, %s1027_s23   ;;  %s1298_s18 = smov %s1011_s19 }
 0x169   : > { %p15_p6 = scmp.ge.s32.totalorder %s18_s23, 4   ;;  %s1299_s19 = smov %s1015_s20 }
 0x16a   : > { %s1300_s20 = smov %s1108_s28  ;;  %s1301_s21 = smov %s1023_s22 }
 0x16b   : > { %s1302_s22 = smov %s1304_s24  ;;  %17 = sbr.rel (!%p15_p6) target bundleno = 4 (0x4), region = 128 }
 0x170   :  { %727 = vsyncpa [#allocation5], 1 }
 0x171   :  { %729 = vsyncpa [#allocation5 + $0x1], 1 }

</bundles_post_ra>
